<compile_context>
chip_gen: v7x
topology: tpu7x:2x2x1
jax: 0.10.0
libtpu: 0.0.40
codegen_flags: <defaults>
</compile_context>

<pallas_src>
import math
from functools import partial

import jax
import jax.numpy as jnp
from jax.experimental import pallas as pl
from jax.experimental.pallas import tpu as pltpu

# ----------------------------- small Gemma config -----------------------------
HIDDEN = 32
NUM_HEADS = 4
NUM_KV_HEADS = 2
HEAD_DIM = 16
INTERMEDIATE = 64
NUM_LAYERS = 2
VOCAB = 128
MAX_SEQ = 32          # max_position_embeddings
RMS_EPS = 1e-6
ROPE_THETA = 10000.0

BATCH = 2
SEQ = 8

N_REP = NUM_HEADS // NUM_KV_HEADS
Q_LANES = NUM_HEADS * HEAD_DIM            # 64
KV_LANES = NUM_KV_HEADS * HEAD_DIM        # 32
QKV_LANES = Q_LANES + 2 * KV_LANES        # 128 (lane-dense)

NEG_INF = -2.3819763e38  # Gemma's causal-mask fill value


# ----------------------------- fused forward kernel ---------------------------
def _gemma_forward_kernel(scalar_ref,                          # SMEM: [kv_write_pos0, out_pos]
                          hs_ref, cos_ref, sin_ref, rot_ref, mask_ref,
                          qkv_w_ref, o_w_ref, gu_w_ref, down_w_ref,
                          in_ln_ref, post_ln_ref, final_ln_ref, emb_t_ref,
                          k_in_ref, v_in_ref,
                          logits_ref, k_out_ref, v_out_ref):
    """One grid step = one batch element. Runs the full 2-layer Gemma forward."""
    f32 = jnp.float32
    T, S, D = SEQ, MAX_SEQ, HEAD_DIM
    scale = HEAD_DIM ** -0.5

    pos0 = scalar_ref[0]      # first kv write position (contiguous prefill / decode window)
    out_pos = scalar_ref[1]   # sampler output position

    cos = cos_ref[...]        # (T, 128): [cos tiled over q/k heads | ones on v lanes]
    sin = sin_ref[...]        # (T, 128): [sin tiled over q/k heads | zeros on v lanes]
    rot = rot_ref[...]        # (128, 128): block-diag per-head rotate-half; zero on v lanes
    mask_g = mask_ref[...]    # (N_REP*T, S): additive causal mask tiled over grouped q heads

    def rms(x, w):  # Gemma RMSNorm with unit offset: x * rsqrt(mean(x^2)+eps) * (1 + w)
        var = jnp.mean(x * x, axis=-1, keepdims=True)
        return x * jax.lax.rsqrt(var + RMS_EPS) * (1.0 + w)

    # Carry old cache rows forward once; fresh rows are overwritten per layer below.
    # TODO(synk): at realistic MAX_SEQ keep the caches in pl.ANY/HBM and DMA only the
    # newly written rows instead of this full-block copy-through.
    k_out_ref[...] = k_in_ref[...]
    v_out_ref[...] = v_in_ref[...]

    # embedding normalizer (hidden * sqrt(hidden)) applied in-kernel
    h = hs_ref[0].astype(f32) * (HIDDEN ** 0.5)                     # (T, HIDDEN)

    for l in range(NUM_LAYERS):
        # ------------------------ self-attention ------------------------
        x = rms(h, in_ln_ref[l])                                    # (T, HIDDEN)
        # single fused QKV projection, lane-dense (T, 128)
        qkv = jnp.dot(x, qkv_w_ref[l], preferred_element_type=f32)
        # head-batched RoPE over the packed q|k lanes (v lanes pass through)
        qkv = qkv * cos + jnp.dot(qkv, rot, preferred_element_type=f32) * sin

        k_new = qkv[:, Q_LANES:Q_LANES + KV_LANES]                  # (T, KV*D) packed
        v_new = qkv[:, Q_LANES + KV_LANES:]                         # (T, KV*D) packed

        # KV-cache index_copy_: contiguous dynamic-slice store at pos0 (scalar prefetch)
        k_out_ref[l, 0, pl.ds(pos0, T), :] = k_new
        v_out_ref[l, 0, pl.ds(pos0, T), :] = v_new
        k_full = k_out_ref[l, 0]                                    # (S, KV*D)
        v_full = v_out_ref[l, 0]

        head_outs = []
        for g in range(NUM_KV_HEADS):
            k_g = k_full[:, g * D:(g + 1) * D]                      # (S, D)
            v_g = v_full[:, g * D:(g + 1) * D]                      # (S, D)
            # stack this group's N_REP query heads along sublanes -> one scores matmul,
            # one softmax and one P@V per group
            q_grp = jnp.concatenate(
                [qkv[:, (g * N_REP + r) * D:(g * N_REP + r + 1) * D]
                 for r in range(N_REP)], axis=0)                    # (N_REP*T, D)
            scores = jax.lax.dot_general(
                q_grp, k_g, (((1,), (1,)), ((), ())),
                preferred_element_type=f32) * scale                 # (N_REP*T, S)
            scores = scores + mask_g
            scores = scores - jnp.max(scores, axis=-1, keepdims=True)
            p = jnp.exp(scores)
            p = p * pl.reciprocal(jnp.sum(p, axis=-1, keepdims=True), approx=True)
            pv = jnp.dot(p, v_g, preferred_element_type=f32)        # (N_REP*T, D)
            for r in range(N_REP):
                head_outs.append(pv[r * T:(r + 1) * T, :])          # (T, D) sublane-aligned
        attn_slab = jnp.concatenate(head_outs, axis=-1)             # (T, H*D) head-major
        # single fused o-projection
        h = h + jnp.dot(attn_slab, o_w_ref[l], preferred_element_type=f32)

        # ------------------------ MLP (GeGLU) ------------------------
        x = rms(h, post_ln_ref[l])
        gu = jnp.dot(x, gu_w_ref[l], preferred_element_type=f32)    # (T, 128) gate|up fused
        gate = gu[:, :INTERMEDIATE]
        up = gu[:, INTERMEDIATE:]
        gelu = 0.5 * gate * (1.0 + jax.lax.erf(gate * (1.0 / math.sqrt(2.0))))  # exact GELU
        h = h + jnp.dot(gelu * up, down_w_ref[l], preferred_element_type=f32)

    # ---------------- final norm + logits for the sampled row only ----------------
    row_sel = (jax.lax.broadcasted_iota(jnp.int32, (1, T), 1) == out_pos).astype(f32)
    row = jnp.dot(row_sel, h, preferred_element_type=f32)           # (1, HIDDEN)
    hn = rms(row, final_ln_ref[...])
    logits_ref[0] = jnp.dot(hn, emb_t_ref[...], preferred_element_type=f32)  # (1, VOCAB)


def _rep_spec(a):
    """Full-array block, same for every grid step (grid-invariant resident weight)."""
    nd = a.ndim
    return pl.BlockSpec(a.shape, lambda b, s_, nd=nd: (0,) * nd)


@partial(jax.jit, donate_argnums=(3, 4))
def gemma_forward(params, token_ids, input_positions, k_cache, v_cache, mask,
                  output_positions):
    B, T = token_ids.shape

    # ---- plain-JAX glue (tiny): embedding gather, RoPE tables, mask tiling ----
    hs = params["embedder"][token_ids]                       # (B, T, HIDDEN)
    c = params["rope_cos"][input_positions]                  # (T, D/2)
    s = params["rope_sin"][input_positions]
    cos16 = jnp.concatenate([c, c], axis=-1)                 # (T, D)
    sin16 = jnp.concatenate([s, s], axis=-1)
    n_rope = NUM_HEADS + NUM_KV_HEADS
    cos_pk = jnp.concatenate(
        [jnp.tile(cos16, (1, n_rope)), jnp.ones((T, KV_LANES), jnp.float32)], axis=-1)
    sin_pk = jnp.concatenate(
        [jnp.tile(sin16, (1, n_rope)), jnp.zeros((T, KV_LANES), jnp.float32)], axis=-1)
    mask_g = jnp.tile(mask.reshape(T, MAX_SEQ).astype(jnp.float32), (N_REP, 1))

    # kv write offset + sampler position, prefetched into SMEM.
    # NOTE: assumes kv_write_indices (== input_positions) form a contiguous window,
    # which holds for prefill (arange) and single-token decode.
    scalars = jnp.stack([input_positions[0], output_positions[0]]).astype(jnp.int32)

    inputs = (scalars, hs, cos_pk, sin_pk, params["rope_rot"], mask_g,
              params["qkv_w"], params["o_w"], params["gu_w"], params["down_w"],
              params["input_ln"], params["post_ln"], params["final_ln"],
              params["embedder_t"], k_cache, v_cache)

    cache_block = (NUM_LAYERS, 1, MAX_SEQ, KV_LANES)
    cache_spec = pl.BlockSpec(cache_block, lambda b, s_: (0, b, 0, 0))

    in_specs = ([pl.BlockSpec((1, T, HIDDEN), lambda b, s_: (b, 0, 0))]
                + [_rep_spec(a) for a in inputs[2:14]]
                + [cache_spec, cache_spec])

    out_shape = (
        jax.ShapeDtypeStruct((B, 1, VOCAB), jnp.float32),    # logits at the output row only
        jax.ShapeDtypeStruct(k_cache.shape, jnp.float32),
        jax.ShapeDtypeStruct(v_cache.shape, jnp.float32),
    )
    out_specs = (
        pl.BlockSpec((1, 1, VOCAB), lambda b, s_: (b, 0, 0)),  # lane-dense (VOCAB=128) store
        cache_spec,
        cache_spec,
    )

    logits, k_new, v_new = pl.pallas_call(
        _gemma_forward_kernel,
        out_shape=out_shape,
        grid_spec=pltpu.PrefetchScalarGridSpec(
            num_scalar_prefetch=1,
            grid=(B,),
            in_specs=in_specs,
            out_specs=out_specs),
        # in-place KV caches; indices count the scalar-prefetch operand as well.
        input_output_aliases={14: 1, 15: 2},
        compiler_params=pltpu.CompilerParams(dimension_semantics=("parallel",)),
    )(*inputs)

    # ---- sampler (temperatures=None path -> greedy argmax) ----
    # TODO(synk): top-p/top-k multinomial sampling path (temperatures != None) not implemented.
    next_tokens = jnp.argmax(logits[:, 0, :], axis=-1)       # (B,)
    return next_tokens, k_new, v_new


# ----------------------------- params / tables ---------------------------------
def precompute_freqs(dim, end, theta=ROPE_THETA):
    inv = 1.0 / (theta ** (jnp.arange(0, dim, 2)[: dim // 2].astype(jnp.float32) / dim))
    t = jnp.arange(end, dtype=jnp.float32)
    freqs = jnp.outer(t, inv)                                 # (end, dim//2)
    return jnp.cos(freqs), jnp.sin(freqs)


def init_params(key):
    q_size = NUM_HEADS * HEAD_DIM
    kv_size = NUM_KV_HEADS * HEAD_DIM
    qkv_out = q_size + 2 * kv_size                            # 128

    k_emb, key = jax.random.split(key)
    embedder = 0.02 * jax.random.normal(k_emb, (VOCAB, HIDDEN), jnp.float32)
    cos, sin = precompute_freqs(HEAD_DIM, MAX_SEQ * 2)

    qkv_w, o_w, gu_w, down_w, in_ln, post_ln = [], [], [], [], [], []
    for _ in range(NUM_LAYERS):
        keys = jax.random.split(key, 8)
        key = keys[-1]
        qkv = 0.02 * jax.random.normal(keys[0], (qkv_out, HIDDEN), jnp.float32)
        qkv_w.append(qkv.T)                                   # (HIDDEN, 128): [q|k|v] lanes
        o = 0.02 * jax.random.normal(keys[1], (HIDDEN, q_size), jnp.float32)
        o_w.append(o.T)                                       # (H*D, HIDDEN) head-major rows
        gate = 0.02 * jax.random.normal(keys[2], (INTERMEDIATE, HIDDEN), jnp.float32)
        up = 0.02 * jax.random.normal(keys[3], (INTERMEDIATE, HIDDEN), jnp.float32)
        gu_w.append(jnp.concatenate([gate.T, up.T], axis=-1))  # (HIDDEN, 128): [gate|up]
        down = 0.02 * jax.random.normal(keys[4], (HIDDEN, INTERMEDIATE), jnp.float32)
        down_w.append(down.T)                                 # (INTER, HIDDEN)
        in_ln.append(0.1 * jax.random.normal(keys[5], (1, HIDDEN), jnp.float32))
        post_ln.append(0.1 * jax.random.normal(keys[6], (1, HIDDEN), jnp.float32))
    k_norm, key = jax.random.split(key)

    # RoPE rotate-half for ALL q+k heads as one block-diagonal (128,128) matmul:
    # per-head (x @ rot16)[:, :D/2] = -x2, [:, D/2:] = x1; v lanes get a zero block.
    half = HEAD_DIM // 2
    idx = jnp.arange(half)
    rot16 = jnp.zeros((HEAD_DIM, HEAD_DIM), jnp.float32)
    rot16 = rot16.at[idx + half, idx].set(-1.0)
    rot16 = rot16.at[idx, idx + half].set(1.0)
    rot = jnp.zeros((qkv_out, qkv_out), jnp.float32)
    for hh in range(NUM_HEADS + NUM_KV_HEADS):
        rot = rot.at[hh * HEAD_DIM:(hh + 1) * HEAD_DIM,
                     hh * HEAD_DIM:(hh + 1) * HEAD_DIM].set(rot16)

    return {
        "embedder": embedder,                 # (VOCAB, HIDDEN) for the gather
        "embedder_t": embedder.T,             # (HIDDEN, VOCAB) pre-transposed for logits
        "rope_cos": cos, "rope_sin": sin, "rope_rot": rot,
        "qkv_w": jnp.stack(qkv_w),            # (L, HIDDEN, 128)
        "o_w": jnp.stack(o_w),                # (L, H*D, HIDDEN)
        "gu_w": jnp.stack(gu_w),              # (L, HIDDEN, 2*INTER)
        "down_w": jnp.stack(down_w),          # (L, INTER, HIDDEN)
        "input_ln": jnp.stack(in_ln),         # (L, 1, HIDDEN)
        "post_ln": jnp.stack(post_ln),        # (L, 1, HIDDEN)
        "final_ln": 0.1 * jax.random.normal(k_norm, (1, HIDDEN), jnp.float32),
    }


# ----------------------------- driver ------------------------------------------
if __name__ == "__main__":
    root = jax.random.PRNGKey(0)
    k_params, k_tok = jax.random.split(root)
    params = init_params(k_params)

    input_token_ids = jax.random.randint(k_tok, (BATCH, SEQ), 0, VOCAB, dtype=jnp.int32)
    input_positions = jnp.arange(SEQ, dtype=jnp.int32)
    output_positions = jnp.array([SEQ - 1], dtype=jnp.int32)

    # KV cache in kernel-friendly lane-dense layout:
    # (layers, batch, max_seq, kv_heads * head_dim)  [== reshape of (.., kv_heads, head_dim)]
    k_cache = jnp.zeros((NUM_LAYERS, BATCH, MAX_SEQ, KV_LANES), jnp.float32)
    v_cache = jnp.zeros_like(k_cache)

    # causal mask over the full cache length (future / unwritten slots masked out)
    causal = jnp.arange(MAX_SEQ)[None, :] <= input_positions[:, None]       # (T, MAX_SEQ)
    mask = jnp.where(causal, 0.0, NEG_INF).astype(jnp.float32)[None, None]  # (1,1,T,MAX_SEQ)

    next_tokens, k_new, v_new = gemma_forward(
        params, input_token_ids, input_positions, k_cache, v_cache, mask, output_positions
    )
    jax.block_until_ready((next_tokens, k_new, v_new))
    assert next_tokens.shape == (BATCH,)
    print("KERNEL_OK")
</pallas_src>

<mosaic_0001>
module attributes {stable_mosaic.version = 11 : i64} {
  func.func @_gemma_forward_kernel(%arg0: i32, %arg1: memref<2xi32, #tpu.memory_space<smem>>, %arg2: memref<1x8x32xf32, #tpu.memory_space<vmem>>, %arg3: memref<8x128xf32, #tpu.memory_space<vmem>>, %arg4: memref<8x128xf32, #tpu.memory_space<vmem>>, %arg5: memref<128x128xf32, #tpu.memory_space<vmem>>, %arg6: memref<16x32xf32, #tpu.memory_space<vmem>>, %arg7: memref<2x32x128xf32, #tpu.memory_space<vmem>>, %arg8: memref<2x64x32xf32, #tpu.memory_space<vmem>>, %arg9: memref<2x32x128xf32, #tpu.memory_space<vmem>>, %arg10: memref<2x64x32xf32, #tpu.memory_space<vmem>>, %arg11: memref<2x1x32xf32, #tpu.memory_space<vmem>>, %arg12: memref<2x1x32xf32, #tpu.memory_space<vmem>>, %arg13: memref<1x32xf32, #tpu.memory_space<vmem>>, %arg14: memref<32x128xf32, #tpu.memory_space<vmem>>, %arg15: memref<2x1x32x32xf32, #tpu.memory_space<vmem>>, %arg16: memref<2x1x32x32xf32, #tpu.memory_space<vmem>>, %arg17: memref<1x1x128xf32, #tpu.memory_space<vmem>>, %arg18: memref<2x1x32x32xf32, #tpu.memory_space<vmem>>, %arg19: memref<2x1x32x32xf32, #tpu.memory_space<vmem>>) attributes {dimension_semantics = [#tpu.dimension_semantics<parallel>], iteration_bounds = array<i64: 2>, scalar_prefetch = 1 : i64, scratch_operands = 0 : i64, tpu.core_type = #tpu.core_type<tc>, window_params = [{transform_indices = @transform_0, window_bounds = array<i64: 1, 8, 32>}, {pipeline_mode = #tpu.pipeline_mode<synchronous>, transform_indices = @transform_1, window_bounds = array<i64: 8, 128>}, {pipeline_mode = #tpu.pipeline_mode<synchronous>, transform_indices = @transform_2, window_bounds = array<i64: 8, 128>}, {pipeline_mode = #tpu.pipeline_mode<synchronous>, transform_indices = @transform_3, window_bounds = array<i64: 128, 128>}, {pipeline_mode = #tpu.pipeline_mode<synchronous>, transform_indices = @transform_4, window_bounds = array<i64: 16, 32>}, {pipeline_mode = #tpu.pipeline_mode<synchronous>, transform_indices = @transform_5, window_bounds = array<i64: 2, 32, 128>}, {pipeline_mode = #tpu.pipeline_mode<synchronous>, transform_indices = @transform_6, window_bounds = array<i64: 2, 64, 32>}, {pipeline_mode = #tpu.pipeline_mode<synchronous>, transform_indices = @transform_7, window_bounds = array<i64: 2, 32, 128>}, {pipeline_mode = #tpu.pipeline_mode<synchronous>, transform_indices = @transform_8, window_bounds = array<i64: 2, 64, 32>}, {pipeline_mode = #tpu.pipeline_mode<synchronous>, transform_indices = @transform_9, window_bounds = array<i64: 2, 1, 32>}, {pipeline_mode = #tpu.pipeline_mode<synchronous>, transform_indices = @transform_10, window_bounds = array<i64: 2, 1, 32>}, {pipeline_mode = #tpu.pipeline_mode<synchronous>, transform_indices = @transform_11, window_bounds = array<i64: 1, 32>}, {pipeline_mode = #tpu.pipeline_mode<synchronous>, transform_indices = @transform_12, window_bounds = array<i64: 32, 128>}, {transform_indices = @transform_13, window_bounds = array<i64: 2, 1, 32, 32>}, {transform_indices = @transform_14, window_bounds = array<i64: 2, 1, 32, 32>}, {transform_indices = @transform_15, window_bounds = array<i64: 1, 1, 128>}, {transform_indices = @transform_16, window_bounds = array<i64: 2, 1, 32, 32>}, {transform_indices = @transform_17, window_bounds = array<i64: 2, 1, 32, 32>}]} {
    %c0 = arith.constant 0 : index
    %0 = memref.load %arg1[%c0] : memref<2xi32, #tpu.memory_space<smem>>
    %c1 = arith.constant 1 : index
    %1 = memref.load %arg1[%c1] : memref<2xi32, #tpu.memory_space<smem>>
    %c0_0 = arith.constant 0 : index
    %c0_1 = arith.constant 0 : index
    %2 = vector.load %arg3[%c0_0, %c0_1] : memref<8x128xf32, #tpu.memory_space<vmem>>, vector<8x128xf32>
    %c0_2 = arith.constant 0 : index
    %c0_3 = arith.constant 0 : index
    %3 = vector.load %arg4[%c0_2, %c0_3] : memref<8x128xf32, #tpu.memory_space<vmem>>, vector<8x128xf32>
    %c0_4 = arith.constant 0 : index
    %c0_5 = arith.constant 0 : index
    %4 = vector.load %arg5[%c0_4, %c0_5] : memref<128x128xf32, #tpu.memory_space<vmem>>, vector<128x128xf32>
    %c0_6 = arith.constant 0 : index
    %c0_7 = arith.constant 0 : index
    %5 = vector.load %arg6[%c0_6, %c0_7] : memref<16x32xf32, #tpu.memory_space<vmem>>, vector<16x32xf32>
    %c0_8 = arith.constant 0 : index
    %c0_9 = arith.constant 0 : index
    %c0_10 = arith.constant 0 : index
    %c0_11 = arith.constant 0 : index
    %6 = vector.load %arg15[%c0_8, %c0_9, %c0_10, %c0_11] : memref<2x1x32x32xf32, #tpu.memory_space<vmem>>, vector<2x1x32x32xf32>
    %c0_12 = arith.constant 0 : index
    %c0_13 = arith.constant 0 : index
    %c0_14 = arith.constant 0 : index
    %c0_15 = arith.constant 0 : index
    %7 = vector.load %arg18[%c0_12, %c0_13, %c0_14, %c0_15] : memref<2x1x32x32xf32, #tpu.memory_space<vmem>>, vector<2x1x32x32xf32>
    tpu.vector_store %arg18[%c0_12, %c0_13, %c0_14, %c0_15], %6 {strides = array<i32>} : memref<2x1x32x32xf32, #tpu.memory_space<vmem>>, vector<2x1x32x32xf32>,
    %c0_16 = arith.constant 0 : index
    %c0_17 = arith.constant 0 : index
    %c0_18 = arith.constant 0 : index
    %c0_19 = arith.constant 0 : index
    %8 = vector.load %arg16[%c0_16, %c0_17, %c0_18, %c0_19] : memref<2x1x32x32xf32, #tpu.memory_space<vmem>>, vector<2x1x32x32xf32>
    %c0_20 = arith.constant 0 : index
    %c0_21 = arith.constant 0 : index
    %c0_22 = arith.constant 0 : index
    %c0_23 = arith.constant 0 : index
    %9 = vector.load %arg19[%c0_20, %c0_21, %c0_22, %c0_23] : memref<2x1x32x32xf32, #tpu.memory_space<vmem>>, vector<2x1x32x32xf32>
    tpu.vector_store %arg19[%c0_20, %c0_21, %c0_22, %c0_23], %8 {strides = array<i32>} : memref<2x1x32x32xf32, #tpu.memory_space<vmem>>, vector<2x1x32x32xf32>,
    %c0_24 = arith.constant 0 : index
    %c0_25 = arith.constant 0 : index
    %c0_26 = arith.constant 0 : index
    %10 = vector.load %arg2[%c0_24, %c0_25, %c0_26] : memref<1x8x32xf32, #tpu.memory_space<vmem>>, vector<1x8x32xf32>
    %11 = vector.shape_cast %10 : vector<1x8x32xf32> to vector<8x32xf32>
    %cst = arith.constant 5.65685415 : f32
    %12 = vector.broadcast %cst : f32 to vector<8x32xf32>
    %13 = arith.mulf %11, %12 : vector<8x32xf32>
    %c0_27 = arith.constant 0 : index
    %c0_28 = arith.constant 0 : index
    %c0_29 = arith.constant 0 : index
    %14 = vector.load %arg11[%c0_27, %c0_28, %c0_29] : memref<2x1x32xf32, #tpu.memory_space<vmem>>, vector<1x1x32xf32>
    %15 = vector.shape_cast %14 : vector<1x1x32xf32> to vector<1x32xf32>
    %16 = arith.mulf %13, %13 : vector<8x32xf32>
    %cst_30 = arith.constant dense<0.000000e+00> : vector<8xf32>
    %17 = vector.multi_reduction <add>, %16, %cst_30 [1] : vector<8x32xf32> to vector<8xf32>
    %18 = vector.shape_cast %17 : vector<8xf32> to vector<8x1xf32>
    %cst_31 = arith.constant 3.200000e+01 : f32
    %19 = vector.broadcast %cst_31 : f32 to vector<8x1xf32>
    %20 = arith.divf %18, %19 : vector<8x1xf32>
    %cst_32 = arith.constant 9.99999997E-7 : f32
    %21 = vector.broadcast %cst_32 : f32 to vector<8x1xf32>
    %22 = arith.addf %20, %21 : vector<8x1xf32>
    %23 = math.rsqrt %22 : vector<8x1xf32>
    %24 = vector.broadcast %23 : vector<8x1xf32> to vector<8x32xf32>
    %25 = arith.mulf %13, %24 : vector<8x32xf32>
    %cst_33 = arith.constant 1.000000e+00 : f32
    %26 = vector.broadcast %cst_33 : f32 to vector<1x32xf32>
    %27 = arith.addf %26, %15 : vector<1x32xf32>
    %28 = vector.broadcast %27 : vector<1x32xf32> to vector<8x32xf32>
    %29 = arith.mulf %25, %28 : vector<8x32xf32>
    %c0_34 = arith.constant 0 : index
    %c0_35 = arith.constant 0 : index
    %c0_36 = arith.constant 0 : index
    %30 = vector.load %arg7[%c0_34, %c0_35, %c0_36] : memref<2x32x128xf32, #tpu.memory_space<vmem>>, vector<1x32x128xf32>
    %31 = vector.shape_cast %30 : vector<1x32x128xf32> to vector<32x128xf32>
    %cst_37 = arith.constant dense<0.000000e+00> : vector<8x128xf32>
    %32 = tpu.matmul %29, %31, %cst_37 {dimension_numbers = #tpu.dot_dimension_numbers<[1], [0], [0], [1], [0, 0, 1, 1], [], []>} : vector<8x32xf32>, vector<32x128xf32>, vector<8x128xf32> -> vector<8x128xf32>
    %33 = arith.mulf %32, %2 : vector<8x128xf32>
    %cst_38 = arith.constant dense<0.000000e+00> : vector<8x128xf32>
    %34 = tpu.matmul %32, %4, %cst_38 {dimension_numbers = #tpu.dot_dimension_numbers<[1], [0], [0], [1], [0, 0, 1, 1], [], []>} : vector<8x128xf32>, vector<128x128xf32>, vector<8x128xf32> -> vector<8x128xf32>
    %35 = arith.mulf %34, %3 : vector<8x128xf32>
    %36 = arith.addf %33, %35 : vector<8x128xf32>
    %37 = vector.extract_strided_slice %36 {offsets = [0, 64], sizes = [8, 32], strides = [1, 1]} : vector<8x128xf32> to vector<8x32xf32>
    %38 = vector.extract_strided_slice %36 {offsets = [0, 96], sizes = [8, 32], strides = [1, 1]} : vector<8x128xf32> to vector<8x32xf32>
    %c0_39 = arith.constant 0 : index
    %c0_40 = arith.constant 0 : index
    %39 = arith.index_cast %0 : i32 to index
    %c0_41 = arith.constant 0 : index
    %40 = vector.load %arg18[%c0_39, %c0_40, %39, %c0_41] : memref<2x1x32x32xf32, #tpu.memory_space<vmem>>, vector<1x1x8x32xf32>
    %41 = vector.shape_cast %40 : vector<1x1x8x32xf32> to vector<8x32xf32>
    %42 = vector.shape_cast %37 : vector<8x32xf32> to vector<1x1x8x32xf32>
    tpu.vector_store %arg18[%c0_39, %c0_40, %39, %c0_41], %42 {strides = array<i32>} : memref<2x1x32x32xf32, #tpu.memory_space<vmem>>, vector<1x1x8x32xf32>,
    %c0_42 = arith.constant 0 : index
    %c0_43 = arith.constant 0 : index
    %43 = arith.index_cast %0 : i32 to index
    %c0_44 = arith.constant 0 : index
    %44 = vector.load %arg19[%c0_42, %c0_43, %43, %c0_44] : memref<2x1x32x32xf32, #tpu.memory_space<vmem>>, vector<1x1x8x32xf32>
    %45 = vector.shape_cast %44 : vector<1x1x8x32xf32> to vector<8x32xf32>
    %46 = vector.shape_cast %38 : vector<8x32xf32> to vector<1x1x8x32xf32>
    tpu.vector_store %arg19[%c0_42, %c0_43, %43, %c0_44], %46 {strides = array<i32>} : memref<2x1x32x32xf32, #tpu.memory_space<vmem>>, vector<1x1x8x32xf32>,
    %c0_45 = arith.constant 0 : index
    %c0_46 = arith.constant 0 : index
    %c0_47 = arith.constant 0 : index
    %c0_48 = arith.constant 0 : index
    %47 = vector.load %arg18[%c0_45, %c0_46, %c0_47, %c0_48] : memref<2x1x32x32xf32, #tpu.memory_space<vmem>>, vector<1x1x32x32xf32>
    %48 = vector.shape_cast %47 : vector<1x1x32x32xf32> to vector<32x32xf32>
    %c0_49 = arith.constant 0 : index
    %c0_50 = arith.constant 0 : index
    %c0_51 = arith.constant 0 : index
    %c0_52 = arith.constant 0 : index
    %49 = vector.load %arg19[%c0_49, %c0_50, %c0_51, %c0_52] : memref<2x1x32x32xf32, #tpu.memory_space<vmem>>, vector<1x1x32x32xf32>
    %50 = vector.shape_cast %49 : vector<1x1x32x32xf32> to vector<32x32xf32>
    %51 = vector.extract_strided_slice %48 {offsets = [0, 0], sizes = [32, 16], strides = [1, 1]} : vector<32x32xf32> to vector<32x16xf32>
    %52 = vector.extract_strided_slice %50 {offsets = [0, 0], sizes = [32, 16], strides = [1, 1]} : vector<32x32xf32> to vector<32x16xf32>
    %53 = vector.extract_strided_slice %36 {offsets = [0, 0], sizes = [8, 16], strides = [1, 1]} : vector<8x128xf32> to vector<8x16xf32>
    %54 = vector.extract_strided_slice %36 {offsets = [0, 16], sizes = [8, 16], strides = [1, 1]} : vector<8x128xf32> to vector<8x16xf32>
    %55 = tpu.concatenate %53, %54 in 0 : vector<8x16xf32>, vector<8x16xf32> -> vector<16x16xf32>
    %cst_53 = arith.constant dense<0.000000e+00> : vector<16x32xf32>
    %56 = tpu.matmul %55, %51, %cst_53 {dimension_numbers = #tpu.dot_dimension_numbers<[1], [1], [0], [0], [0, 0, 1, 0], [], []>} : vector<16x16xf32>, vector<32x16xf32>, vector<16x32xf32> -> vector<16x32xf32>
    %cst_54 = arith.constant 2.500000e-01 : f32
    %57 = vector.broadcast %cst_54 : f32 to vector<16x32xf32>
    %58 = arith.mulf %56, %57 : vector<16x32xf32>
    %59 = arith.addf %58, %5 : vector<16x32xf32>
    %cst_55 = arith.constant dense<0xFF800000> : vector<16xf32>
    %60 = vector.multi_reduction <maximumf>, %59, %cst_55 [1] : vector<16x32xf32> to vector<16xf32>
    %61 = vector.shape_cast %60 : vector<16xf32> to vector<16x1xf32>
    %62 = vector.broadcast %61 : vector<16x1xf32> to vector<16x32xf32>
    %63 = arith.subf %59, %62 : vector<16x32xf32>
    %64 = math.exp %63 : vector<16x32xf32>
    %cst_56 = arith.constant dense<0.000000e+00> : vector<16xf32>
    %65 = vector.multi_reduction <add>, %64, %cst_56 [1] : vector<16x32xf32> to vector<16xf32>
    %66 = vector.shape_cast %65 : vector<16xf32> to vector<16x1xf32>
    %67 = tpu.reciprocal %66 {approx = true} : vector<16x1xf32> -> vector<16x1xf32>
    %68 = vector.broadcast %67 : vector<16x1xf32> to vector<16x32xf32>
    %69 = arith.mulf %64, %68 : vector<16x32xf32>
    %cst_57 = arith.constant dense<0.000000e+00> : vector<16x16xf32>
    %70 = tpu.matmul %69, %52, %cst_57 {dimension_numbers = #tpu.dot_dimension_numbers<[1], [0], [0], [1], [0, 0, 1, 1], [], []>} : vector<16x32xf32>, vector<32x16xf32>, vector<16x16xf32> -> vector<16x16xf32>
    %71 = vector.extract_strided_slice %70 {offsets = [0, 0], sizes = [8, 16], strides = [1, 1]} : vector<16x16xf32> to vector<8x16xf32>
    %72 = vector.extract_strided_slice %70 {offsets = [8, 0], sizes = [8, 16], strides = [1, 1]} : vector<16x16xf32> to vector<8x16xf32>
    %73 = vector.extract_strided_slice %48 {offsets = [0, 16], sizes = [32, 16], strides = [1, 1]} : vector<32x32xf32> to vector<32x16xf32>
    %74 = vector.extract_strided_slice %50 {offsets = [0, 16], sizes = [32, 16], strides = [1, 1]} : vector<32x32xf32> to vector<32x16xf32>
    %75 = vector.extract_strided_slice %36 {offsets = [0, 32], sizes = [8, 16], strides = [1, 1]} : vector<8x128xf32> to vector<8x16xf32>
    %76 = vector.extract_strided_slice %36 {offsets = [0, 48], sizes = [8, 16], strides = [1, 1]} : vector<8x128xf32> to vector<8x16xf32>
    %77 = tpu.concatenate %75, %76 in 0 : vector<8x16xf32>, vector<8x16xf32> -> vector<16x16xf32>
    %cst_58 = arith.constant dense<0.000000e+00> : vector<16x32xf32>
    %78 = tpu.matmul %77, %73, %cst_58 {dimension_numbers = #tpu.dot_dimension_numbers<[1], [1], [0], [0], [0, 0, 1, 0], [], []>} : vector<16x16xf32>, vector<32x16xf32>, vector<16x32xf32> -> vector<16x32xf32>
    %cst_59 = arith.constant 2.500000e-01 : f32
    %79 = vector.broadcast %cst_59 : f32 to vector<16x32xf32>
    %80 = arith.mulf %78, %79 : vector<16x32xf32>
    %81 = arith.addf %80, %5 : vector<16x32xf32>
    %cst_60 = arith.constant dense<0xFF800000> : vector<16xf32>
    %82 = vector.multi_reduction <maximumf>, %81, %cst_60 [1] : vector<16x32xf32> to vector<16xf32>
    %83 = vector.shape_cast %82 : vector<16xf32> to vector<16x1xf32>
    %84 = vector.broadcast %83 : vector<16x1xf32> to vector<16x32xf32>
    %85 = arith.subf %81, %84 : vector<16x32xf32>
    %86 = math.exp %85 : vector<16x32xf32>
    %cst_61 = arith.constant dense<0.000000e+00> : vector<16xf32>
    %87 = vector.multi_reduction <add>, %86, %cst_61 [1] : vector<16x32xf32> to vector<16xf32>
    %88 = vector.shape_cast %87 : vector<16xf32> to vector<16x1xf32>
    %89 = tpu.reciprocal %88 {approx = true} : vector<16x1xf32> -> vector<16x1xf32>
    %90 = vector.broadcast %89 : vector<16x1xf32> to vector<16x32xf32>
    %91 = arith.mulf %86, %90 : vector<16x32xf32>
    %cst_62 = arith.constant dense<0.000000e+00> : vector<16x16xf32>
    %92 = tpu.matmul %91, %74, %cst_62 {dimension_numbers = #tpu.dot_dimension_numbers<[1], [0], [0], [1], [0, 0, 1, 1], [], []>} : vector<16x32xf32>, vector<32x16xf32>, vector<16x16xf32> -> vector<16x16xf32>
    %93 = vector.extract_strided_slice %92 {offsets = [0, 0], sizes = [8, 16], strides = [1, 1]} : vector<16x16xf32> to vector<8x16xf32>
    %94 = vector.extract_strided_slice %92 {offsets = [8, 0], sizes = [8, 16], strides = [1, 1]} : vector<16x16xf32> to vector<8x16xf32>
    %95 = tpu.concatenate %71, %72, %93, %94 in 1 : vector<8x16xf32>, vector<8x16xf32>, vector<8x16xf32>, vector<8x16xf32> -> vector<8x64xf32>
    %c0_63 = arith.constant 0 : index
    %c0_64 = arith.constant 0 : index
    %c0_65 = arith.constant 0 : index
    %96 = vector.load %arg8[%c0_63, %c0_64, %c0_65] : memref<2x64x32xf32, #tpu.memory_space<vmem>>, vector<1x64x32xf32>
    %97 = vector.shape_cast %96 : vector<1x64x32xf32> to vector<64x32xf32>
    %cst_66 = arith.constant dense<0.000000e+00> : vector<8x32xf32>
    %98 = tpu.matmul %95, %97, %cst_66 {dimension_numbers = #tpu.dot_dimension_numbers<[1], [0], [0], [1], [0, 0, 1, 1], [], []>} : vector<8x64xf32>, vector<64x32xf32>, vector<8x32xf32> -> vector<8x32xf32>
    %99 = arith.addf %13, %98 : vector<8x32xf32>
    %c0_67 = arith.constant 0 : index
    %c0_68 = arith.constant 0 : index
    %c0_69 = arith.constant 0 : index
    %100 = vector.load %arg12[%c0_67, %c0_68, %c0_69] : memref<2x1x32xf32, #tpu.memory_space<vmem>>, vector<1x1x32xf32>
    %101 = vector.shape_cast %100 : vector<1x1x32xf32> to vector<1x32xf32>
    %102 = arith.mulf %99, %99 : vector<8x32xf32>
    %cst_70 = arith.constant dense<0.000000e+00> : vector<8xf32>
    %103 = vector.multi_reduction <add>, %102, %cst_70 [1] : vector<8x32xf32> to vector<8xf32>
    %104 = vector.shape_cast %103 : vector<8xf32> to vector<8x1xf32>
    %cst_71 = arith.constant 3.200000e+01 : f32
    %105 = vector.broadcast %cst_71 : f32 to vector<8x1xf32>
    %106 = arith.divf %104, %105 : vector<8x1xf32>
    %cst_72 = arith.constant 9.99999997E-7 : f32
    %107 = vector.broadcast %cst_72 : f32 to vector<8x1xf32>
    %108 = arith.addf %106, %107 : vector<8x1xf32>
    %109 = math.rsqrt %108 : vector<8x1xf32>
    %110 = vector.broadcast %109 : vector<8x1xf32> to vector<8x32xf32>
    %111 = arith.mulf %99, %110 : vector<8x32xf32>
    %cst_73 = arith.constant 1.000000e+00 : f32
    %112 = vector.broadcast %cst_73 : f32 to vector<1x32xf32>
    %113 = arith.addf %112, %101 : vector<1x32xf32>
    %114 = vector.broadcast %113 : vector<1x32xf32> to vector<8x32xf32>
    %115 = arith.mulf %111, %114 : vector<8x32xf32>
    %c0_74 = arith.constant 0 : index
    %c0_75 = arith.constant 0 : index
    %c0_76 = arith.constant 0 : index
    %116 = vector.load %arg9[%c0_74, %c0_75, %c0_76] : memref<2x32x128xf32, #tpu.memory_space<vmem>>, vector<1x32x128xf32>
    %117 = vector.shape_cast %116 : vector<1x32x128xf32> to vector<32x128xf32>
    %cst_77 = arith.constant dense<0.000000e+00> : vector<8x128xf32>
    %118 = tpu.matmul %115, %117, %cst_77 {dimension_numbers = #tpu.dot_dimension_numbers<[1], [0], [0], [1], [0, 0, 1, 1], [], []>} : vector<8x32xf32>, vector<32x128xf32>, vector<8x128xf32> -> vector<8x128xf32>
    %119 = vector.extract_strided_slice %118 {offsets = [0, 0], sizes = [8, 64], strides = [1, 1]} : vector<8x128xf32> to vector<8x64xf32>
    %120 = vector.extract_strided_slice %118 {offsets = [0, 64], sizes = [8, 64], strides = [1, 1]} : vector<8x128xf32> to vector<8x64xf32>
    %cst_78 = arith.constant 5.000000e-01 : f32
    %121 = vector.broadcast %cst_78 : f32 to vector<8x64xf32>
    %122 = arith.mulf %121, %119 : vector<8x64xf32>
    %cst_79 = arith.constant 0.707106769 : f32
    %123 = vector.broadcast %cst_79 : f32 to vector<8x64xf32>
    %124 = arith.mulf %119, %123 : vector<8x64xf32>
    %125 = math.erf %124 : vector<8x64xf32>
    %cst_80 = arith.constant 1.000000e+00 : f32
    %126 = vector.broadcast %cst_80 : f32 to vector<8x64xf32>
    %127 = arith.addf %126, %125 : vector<8x64xf32>
    %128 = arith.mulf %122, %127 : vector<8x64xf32>
    %129 = arith.mulf %128, %120 : vector<8x64xf32>
    %c0_81 = arith.constant 0 : index
    %c0_82 = arith.constant 0 : index
    %c0_83 = arith.constant 0 : index
    %130 = vector.load %arg10[%c0_81, %c0_82, %c0_83] : memref<2x64x32xf32, #tpu.memory_space<vmem>>, vector<1x64x32xf32>
    %131 = vector.shape_cast %130 : vector<1x64x32xf32> to vector<64x32xf32>
    %cst_84 = arith.constant dense<0.000000e+00> : vector<8x32xf32>
    %132 = tpu.matmul %129, %131, %cst_84 {dimension_numbers = #tpu.dot_dimension_numbers<[1], [0], [0], [1], [0, 0, 1, 1], [], []>} : vector<8x64xf32>, vector<64x32xf32>, vector<8x32xf32> -> vector<8x32xf32>
    %133 = arith.addf %99, %132 : vector<8x32xf32>
    %c1_85 = arith.constant 1 : index
    %c0_86 = arith.constant 0 : index
    %c0_87 = arith.constant 0 : index
    %134 = vector.load %arg11[%c1_85, %c0_86, %c0_87] : memref<2x1x32xf32, #tpu.memory_space<vmem>>, vector<1x1x32xf32>
    %135 = vector.shape_cast %134 : vector<1x1x32xf32> to vector<1x32xf32>
    %136 = arith.mulf %133, %133 : vector<8x32xf32>
    %cst_88 = arith.constant dense<0.000000e+00> : vector<8xf32>
    %137 = vector.multi_reduction <add>, %136, %cst_88 [1] : vector<8x32xf32> to vector<8xf32>
    %138 = vector.shape_cast %137 : vector<8xf32> to vector<8x1xf32>
    %cst_89 = arith.constant 3.200000e+01 : f32
    %139 = vector.broadcast %cst_89 : f32 to vector<8x1xf32>
    %140 = arith.divf %138, %139 : vector<8x1xf32>
    %cst_90 = arith.constant 9.99999997E-7 : f32
    %141 = vector.broadcast %cst_90 : f32 to vector<8x1xf32>
    %142 = arith.addf %140, %141 : vector<8x1xf32>
    %143 = math.rsqrt %142 : vector<8x1xf32>
    %144 = vector.broadcast %143 : vector<8x1xf32> to vector<8x32xf32>
    %145 = arith.mulf %133, %144 : vector<8x32xf32>
    %cst_91 = arith.constant 1.000000e+00 : f32
    %146 = vector.broadcast %cst_91 : f32 to vector<1x32xf32>
    %147 = arith.addf %146, %135 : vector<1x32xf32>
    %148 = vector.broadcast %147 : vector<1x32xf32> to vector<8x32xf32>
    %149 = arith.mulf %145, %148 : vector<8x32xf32>
    %c1_92 = arith.constant 1 : index
    %c0_93 = arith.constant 0 : index
    %c0_94 = arith.constant 0 : index
    %150 = vector.load %arg7[%c1_92, %c0_93, %c0_94] : memref<2x32x128xf32, #tpu.memory_space<vmem>>, vector<1x32x128xf32>
    %151 = vector.shape_cast %150 : vector<1x32x128xf32> to vector<32x128xf32>
    %cst_95 = arith.constant dense<0.000000e+00> : vector<8x128xf32>
    %152 = tpu.matmul %149, %151, %cst_95 {dimension_numbers = #tpu.dot_dimension_numbers<[1], [0], [0], [1], [0, 0, 1, 1], [], []>} : vector<8x32xf32>, vector<32x128xf32>, vector<8x128xf32> -> vector<8x128xf32>
    %153 = arith.mulf %152, %2 : vector<8x128xf32>
    %cst_96 = arith.constant dense<0.000000e+00> : vector<8x128xf32>
    %154 = tpu.matmul %152, %4, %cst_96 {dimension_numbers = #tpu.dot_dimension_numbers<[1], [0], [0], [1], [0, 0, 1, 1], [], []>} : vector<8x128xf32>, vector<128x128xf32>, vector<8x128xf32> -> vector<8x128xf32>
    %155 = arith.mulf %154, %3 : vector<8x128xf32>
    %156 = arith.addf %153, %155 : vector<8x128xf32>
    %157 = vector.extract_strided_slice %156 {offsets = [0, 64], sizes = [8, 32], strides = [1, 1]} : vector<8x128xf32> to vector<8x32xf32>
    %158 = vector.extract_strided_slice %156 {offsets = [0, 96], sizes = [8, 32], strides = [1, 1]} : vector<8x128xf32> to vector<8x32xf32>
    %c1_97 = arith.constant 1 : index
    %c0_98 = arith.constant 0 : index
    %159 = arith.index_cast %0 : i32 to index
    %c0_99 = arith.constant 0 : index
    %160 = vector.load %arg18[%c1_97, %c0_98, %159, %c0_99] : memref<2x1x32x32xf32, #tpu.memory_space<vmem>>, vector<1x1x8x32xf32>
    %161 = vector.shape_cast %160 : vector<1x1x8x32xf32> to vector<8x32xf32>
    %162 = vector.shape_cast %157 : vector<8x32xf32> to vector<1x1x8x32xf32>
    tpu.vector_store %arg18[%c1_97, %c0_98, %159, %c0_99], %162 {strides = array<i32>} : memref<2x1x32x32xf32, #tpu.memory_space<vmem>>, vector<1x1x8x32xf32>,
    %c1_100 = arith.constant 1 : index
    %c0_101 = arith.constant 0 : index
    %163 = arith.index_cast %0 : i32 to index
    %c0_102 = arith.constant 0 : index
    %164 = vector.load %arg19[%c1_100, %c0_101, %163, %c0_102] : memref<2x1x32x32xf32, #tpu.memory_space<vmem>>, vector<1x1x8x32xf32>
    %165 = vector.shape_cast %164 : vector<1x1x8x32xf32> to vector<8x32xf32>
    %166 = vector.shape_cast %158 : vector<8x32xf32> to vector<1x1x8x32xf32>
    tpu.vector_store %arg19[%c1_100, %c0_101, %163, %c0_102], %166 {strides = array<i32>} : memref<2x1x32x32xf32, #tpu.memory_space<vmem>>, vector<1x1x8x32xf32>,
    %c1_103 = arith.constant 1 : index
    %c0_104 = arith.constant 0 : index
    %c0_105 = arith.constant 0 : index
    %c0_106 = arith.constant 0 : index
    %167 = vector.load %arg18[%c1_103, %c0_104, %c0_105, %c0_106] : memref<2x1x32x32xf32, #tpu.memory_space<vmem>>, vector<1x1x32x32xf32>
    %168 = vector.shape_cast %167 : vector<1x1x32x32xf32> to vector<32x32xf32>
    %c1_107 = arith.constant 1 : index
    %c0_108 = arith.constant 0 : index
    %c0_109 = arith.constant 0 : index
    %c0_110 = arith.constant 0 : index
    %169 = vector.load %arg19[%c1_107, %c0_108, %c0_109, %c0_110] : memref<2x1x32x32xf32, #tpu.memory_space<vmem>>, vector<1x1x32x32xf32>
    %170 = vector.shape_cast %169 : vector<1x1x32x32xf32> to vector<32x32xf32>
    %171 = vector.extract_strided_slice %168 {offsets = [0, 0], sizes = [32, 16], strides = [1, 1]} : vector<32x32xf32> to vector<32x16xf32>
    %172 = vector.extract_strided_slice %170 {offsets = [0, 0], sizes = [32, 16], strides = [1, 1]} : vector<32x32xf32> to vector<32x16xf32>
    %173 = vector.extract_strided_slice %156 {offsets = [0, 0], sizes = [8, 16], strides = [1, 1]} : vector<8x128xf32> to vector<8x16xf32>
    %174 = vector.extract_strided_slice %156 {offsets = [0, 16], sizes = [8, 16], strides = [1, 1]} : vector<8x128xf32> to vector<8x16xf32>
    %175 = tpu.concatenate %173, %174 in 0 : vector<8x16xf32>, vector<8x16xf32> -> vector<16x16xf32>
    %cst_111 = arith.constant dense<0.000000e+00> : vector<16x32xf32>
    %176 = tpu.matmul %175, %171, %cst_111 {dimension_numbers = #tpu.dot_dimension_numbers<[1], [1], [0], [0], [0, 0, 1, 0], [], []>} : vector<16x16xf32>, vector<32x16xf32>, vector<16x32xf32> -> vector<16x32xf32>
    %cst_112 = arith.constant 2.500000e-01 : f32
    %177 = vector.broadcast %cst_112 : f32 to vector<16x32xf32>
    %178 = arith.mulf %176, %177 : vector<16x32xf32>
    %179 = arith.addf %178, %5 : vector<16x32xf32>
    %cst_113 = arith.constant dense<0xFF800000> : vector<16xf32>
    %180 = vector.multi_reduction <maximumf>, %179, %cst_113 [1] : vector<16x32xf32> to vector<16xf32>
    %181 = vector.shape_cast %180 : vector<16xf32> to vector<16x1xf32>
    %182 = vector.broadcast %181 : vector<16x1xf32> to vector<16x32xf32>
    %183 = arith.subf %179, %182 : vector<16x32xf32>
    %184 = math.exp %183 : vector<16x32xf32>
    %cst_114 = arith.constant dense<0.000000e+00> : vector<16xf32>
    %185 = vector.multi_reduction <add>, %184, %cst_114 [1] : vector<16x32xf32> to vector<16xf32>
    %186 = vector.shape_cast %185 : vector<16xf32> to vector<16x1xf32>
    %187 = tpu.reciprocal %186 {approx = true} : vector<16x1xf32> -> vector<16x1xf32>
    %188 = vector.broadcast %187 : vector<16x1xf32> to vector<16x32xf32>
    %189 = arith.mulf %184, %188 : vector<16x32xf32>
    %cst_115 = arith.constant dense<0.000000e+00> : vector<16x16xf32>
    %190 = tpu.matmul %189, %172, %cst_115 {dimension_numbers = #tpu.dot_dimension_numbers<[1], [0], [0], [1], [0, 0, 1, 1], [], []>} : vector<16x32xf32>, vector<32x16xf32>, vector<16x16xf32> -> vector<16x16xf32>
    %191 = vector.extract_strided_slice %190 {offsets = [0, 0], sizes = [8, 16], strides = [1, 1]} : vector<16x16xf32> to vector<8x16xf32>
    %192 = vector.extract_strided_slice %190 {offsets = [8, 0], sizes = [8, 16], strides = [1, 1]} : vector<16x16xf32> to vector<8x16xf32>
    %193 = vector.extract_strided_slice %168 {offsets = [0, 16], sizes = [32, 16], strides = [1, 1]} : vector<32x32xf32> to vector<32x16xf32>
    %194 = vector.extract_strided_slice %170 {offsets = [0, 16], sizes = [32, 16], strides = [1, 1]} : vector<32x32xf32> to vector<32x16xf32>
    %195 = vector.extract_strided_slice %156 {offsets = [0, 32], sizes = [8, 16], strides = [1, 1]} : vector<8x128xf32> to vector<8x16xf32>
    %196 = vector.extract_strided_slice %156 {offsets = [0, 48], sizes = [8, 16], strides = [1, 1]} : vector<8x128xf32> to vector<8x16xf32>
    %197 = tpu.concatenate %195, %196 in 0 : vector<8x16xf32>, vector<8x16xf32> -> vector<16x16xf32>
    %cst_116 = arith.constant dense<0.000000e+00> : vector<16x32xf32>
    %198 = tpu.matmul %197, %193, %cst_116 {dimension_numbers = #tpu.dot_dimension_numbers<[1], [1], [0], [0], [0, 0, 1, 0], [], []>} : vector<16x16xf32>, vector<32x16xf32>, vector<16x32xf32> -> vector<16x32xf32>
    %cst_117 = arith.constant 2.500000e-01 : f32
    %199 = vector.broadcast %cst_117 : f32 to vector<16x32xf32>
    %200 = arith.mulf %198, %199 : vector<16x32xf32>
    %201 = arith.addf %200, %5 : vector<16x32xf32>
    %cst_118 = arith.constant dense<0xFF800000> : vector<16xf32>
    %202 = vector.multi_reduction <maximumf>, %201, %cst_118 [1] : vector<16x32xf32> to vector<16xf32>
    %203 = vector.shape_cast %202 : vector<16xf32> to vector<16x1xf32>
    %204 = vector.broadcast %203 : vector<16x1xf32> to vector<16x32xf32>
    %205 = arith.subf %201, %204 : vector<16x32xf32>
    %206 = math.exp %205 : vector<16x32xf32>
    %cst_119 = arith.constant dense<0.000000e+00> : vector<16xf32>
    %207 = vector.multi_reduction <add>, %206, %cst_119 [1] : vector<16x32xf32> to vector<16xf32>
    %208 = vector.shape_cast %207 : vector<16xf32> to vector<16x1xf32>
    %209 = tpu.reciprocal %208 {approx = true} : vector<16x1xf32> -> vector<16x1xf32>
    %210 = vector.broadcast %209 : vector<16x1xf32> to vector<16x32xf32>
    %211 = arith.mulf %206, %210 : vector<16x32xf32>
    %cst_120 = arith.constant dense<0.000000e+00> : vector<16x16xf32>
    %212 = tpu.matmul %211, %194, %cst_120 {dimension_numbers = #tpu.dot_dimension_numbers<[1], [0], [0], [1], [0, 0, 1, 1], [], []>} : vector<16x32xf32>, vector<32x16xf32>, vector<16x16xf32> -> vector<16x16xf32>
    %213 = vector.extract_strided_slice %212 {offsets = [0, 0], sizes = [8, 16], strides = [1, 1]} : vector<16x16xf32> to vector<8x16xf32>
    %214 = vector.extract_strided_slice %212 {offsets = [8, 0], sizes = [8, 16], strides = [1, 1]} : vector<16x16xf32> to vector<8x16xf32>
    %215 = tpu.concatenate %191, %192, %213, %214 in 1 : vector<8x16xf32>, vector<8x16xf32>, vector<8x16xf32>, vector<8x16xf32> -> vector<8x64xf32>
    %c1_121 = arith.constant 1 : index
    %c0_122 = arith.constant 0 : index
    %c0_123 = arith.constant 0 : index
    %216 = vector.load %arg8[%c1_121, %c0_122, %c0_123] : memref<2x64x32xf32, #tpu.memory_space<vmem>>, vector<1x64x32xf32>
    %217 = vector.shape_cast %216 : vector<1x64x32xf32> to vector<64x32xf32>
    %cst_124 = arith.constant dense<0.000000e+00> : vector<8x32xf32>
    %218 = tpu.matmul %215, %217, %cst_124 {dimension_numbers = #tpu.dot_dimension_numbers<[1], [0], [0], [1], [0, 0, 1, 1], [], []>} : vector<8x64xf32>, vector<64x32xf32>, vector<8x32xf32> -> vector<8x32xf32>
    %219 = arith.addf %133, %218 : vector<8x32xf32>
    %c1_125 = arith.constant 1 : index
    %c0_126 = arith.constant 0 : index
    %c0_127 = arith.constant 0 : index
    %220 = vector.load %arg12[%c1_125, %c0_126, %c0_127] : memref<2x1x32xf32, #tpu.memory_space<vmem>>, vector<1x1x32xf32>
    %221 = vector.shape_cast %220 : vector<1x1x32xf32> to vector<1x32xf32>
    %222 = arith.mulf %219, %219 : vector<8x32xf32>
    %cst_128 = arith.constant dense<0.000000e+00> : vector<8xf32>
    %223 = vector.multi_reduction <add>, %222, %cst_128 [1] : vector<8x32xf32> to vector<8xf32>
    %224 = vector.shape_cast %223 : vector<8xf32> to vector<8x1xf32>
    %cst_129 = arith.constant 3.200000e+01 : f32
    %225 = vector.broadcast %cst_129 : f32 to vector<8x1xf32>
    %226 = arith.divf %224, %225 : vector<8x1xf32>
    %cst_130 = arith.constant 9.99999997E-7 : f32
    %227 = vector.broadcast %cst_130 : f32 to vector<8x1xf32>
    %228 = arith.addf %226, %227 : vector<8x1xf32>
    %229 = math.rsqrt %228 : vector<8x1xf32>
    %230 = vector.broadcast %229 : vector<8x1xf32> to vector<8x32xf32>
    %231 = arith.mulf %219, %230 : vector<8x32xf32>
    %cst_131 = arith.constant 1.000000e+00 : f32
    %232 = vector.broadcast %cst_131 : f32 to vector<1x32xf32>
    %233 = arith.addf %232, %221 : vector<1x32xf32>
    %234 = vector.broadcast %233 : vector<1x32xf32> to vector<8x32xf32>
    %235 = arith.mulf %231, %234 : vector<8x32xf32>
    %c1_132 = arith.constant 1 : index
    %c0_133 = arith.constant 0 : index
    %c0_134 = arith.constant 0 : index
    %236 = vector.load %arg9[%c1_132, %c0_133, %c0_134] : memref<2x32x128xf32, #tpu.memory_space<vmem>>, vector<1x32x128xf32>
    %237 = vector.shape_cast %236 : vector<1x32x128xf32> to vector<32x128xf32>
    %cst_135 = arith.constant dense<0.000000e+00> : vector<8x128xf32>
    %238 = tpu.matmul %235, %237, %cst_135 {dimension_numbers = #tpu.dot_dimension_numbers<[1], [0], [0], [1], [0, 0, 1, 1], [], []>} : vector<8x32xf32>, vector<32x128xf32>, vector<8x128xf32> -> vector<8x128xf32>
    %239 = vector.extract_strided_slice %238 {offsets = [0, 0], sizes = [8, 64], strides = [1, 1]} : vector<8x128xf32> to vector<8x64xf32>
    %240 = vector.extract_strided_slice %238 {offsets = [0, 64], sizes = [8, 64], strides = [1, 1]} : vector<8x128xf32> to vector<8x64xf32>
    %cst_136 = arith.constant 5.000000e-01 : f32
    %241 = vector.broadcast %cst_136 : f32 to vector<8x64xf32>
    %242 = arith.mulf %241, %239 : vector<8x64xf32>
    %cst_137 = arith.constant 0.707106769 : f32
    %243 = vector.broadcast %cst_137 : f32 to vector<8x64xf32>
    %244 = arith.mulf %239, %243 : vector<8x64xf32>
    %245 = math.erf %244 : vector<8x64xf32>
    %cst_138 = arith.constant 1.000000e+00 : f32
    %246 = vector.broadcast %cst_138 : f32 to vector<8x64xf32>
    %247 = arith.addf %246, %245 : vector<8x64xf32>
    %248 = arith.mulf %242, %247 : vector<8x64xf32>
    %249 = arith.mulf %248, %240 : vector<8x64xf32>
    %c1_139 = arith.constant 1 : index
    %c0_140 = arith.constant 0 : index
    %c0_141 = arith.constant 0 : index
    %250 = vector.load %arg10[%c1_139, %c0_140, %c0_141] : memref<2x64x32xf32, #tpu.memory_space<vmem>>, vector<1x64x32xf32>
    %251 = vector.shape_cast %250 : vector<1x64x32xf32> to vector<64x32xf32>
    %cst_142 = arith.constant dense<0.000000e+00> : vector<8x32xf32>
    %252 = tpu.matmul %249, %251, %cst_142 {dimension_numbers = #tpu.dot_dimension_numbers<[1], [0], [0], [1], [0, 0, 1, 1], [], []>} : vector<8x64xf32>, vector<64x32xf32>, vector<8x32xf32> -> vector<8x32xf32>
    %253 = arith.addf %219, %252 : vector<8x32xf32>
    %254 = tpu.iota {dimensions = array<i32: 1>} : vector<1x8xi32>
    %255 = vector.broadcast %1 : i32 to vector<1x8xi32>
    %256 = arith.cmpi eq, %254, %255 : vector<1x8xi32>
    %257 = arith.extui %256 : vector<1x8xi1> to vector<1x8xi32>
    %258 = arith.sitofp %257 : vector<1x8xi32> to vector<1x8xf32>
    %cst_143 = arith.constant dense<0.000000e+00> : vector<1x32xf32>
    %259 = tpu.matmul %258, %253, %cst_143 {dimension_numbers = #tpu.dot_dimension_numbers<[1], [0], [0], [1], [0, 0, 1, 1], [], []>} : vector<1x8xf32>, vector<8x32xf32>, vector<1x32xf32> -> vector<1x32xf32>
    %c0_144 = arith.constant 0 : index
    %c0_145 = arith.constant 0 : index
    %260 = vector.load %arg13[%c0_144, %c0_145] : memref<1x32xf32, #tpu.memory_space<vmem>>, vector<1x32xf32>
    %261 = arith.mulf %259, %259 : vector<1x32xf32>
    %cst_146 = arith.constant dense<0.000000e+00> : vector<1xf32>
    %262 = vector.multi_reduction <add>, %261, %cst_146 [1] : vector<1x32xf32> to vector<1xf32>
    %263 = vector.shape_cast %262 : vector<1xf32> to vector<1x1xf32>
    %cst_147 = arith.constant 3.200000e+01 : f32
    %264 = vector.broadcast %cst_147 : f32 to vector<1x1xf32>
    %265 = arith.divf %263, %264 : vector<1x1xf32>
    %cst_148 = arith.constant 9.99999997E-7 : f32
    %266 = vector.broadcast %cst_148 : f32 to vector<1x1xf32>
    %267 = arith.addf %265, %266 : vector<1x1xf32>
    %268 = math.rsqrt %267 : vector<1x1xf32>
    %269 = vector.broadcast %268 : vector<1x1xf32> to vector<1x32xf32>
    %270 = arith.mulf %259, %269 : vector<1x32xf32>
    %cst_149 = arith.constant 1.000000e+00 : f32
    %271 = vector.broadcast %cst_149 : f32 to vector<1x32xf32>
    %272 = arith.addf %271, %260 : vector<1x32xf32>
    %273 = arith.mulf %270, %272 : vector<1x32xf32>
    %c0_150 = arith.constant 0 : index
    %c0_151 = arith.constant 0 : index
    %274 = vector.load %arg14[%c0_150, %c0_151] : memref<32x128xf32, #tpu.memory_space<vmem>>, vector<32x128xf32>
    %cst_152 = arith.constant dense<0.000000e+00> : vector<1x128xf32>
    %275 = tpu.matmul %273, %274, %cst_152 {dimension_numbers = #tpu.dot_dimension_numbers<[1], [0], [0], [1], [0, 0, 1, 1], [], []>} : vector<1x32xf32>, vector<32x128xf32>, vector<1x128xf32> -> vector<1x128xf32>
    %c0_153 = arith.constant 0 : index
    %c0_154 = arith.constant 0 : index
    %c0_155 = arith.constant 0 : index
    %276 = vector.load %arg17[%c0_153, %c0_154, %c0_155] : memref<1x1x128xf32, #tpu.memory_space<vmem>>, vector<1x1x128xf32>
    %277 = vector.shape_cast %276 : vector<1x1x128xf32> to vector<1x128xf32>
    %278 = vector.shape_cast %275 : vector<1x128xf32> to vector<1x1x128xf32>
    tpu.vector_store %arg17[%c0_153, %c0_154, %c0_155], %278 {strides = array<i32>} : memref<1x1x128xf32, #tpu.memory_space<vmem>>, vector<1x1x128xf32>,
    return
  }
  func.func @transform_0(%arg0: i32, %arg1: memref<2xi32, #tpu.memory_space<smem>>) -> (i32, i32, i32) {
    %c0_i32 = arith.constant 0 : i32
    %c0_i32_0 = arith.constant 0 : i32
    %c0_i32_1 = arith.constant 0 : i32
    return %arg0, %c0_i32, %c0_i32_0 : i32, i32, i32
  }
  func.func @transform_1(%arg0: i32, %arg1: memref<2xi32, #tpu.memory_space<smem>>) -> (i32, i32) {
    %c0_i32 = arith.constant 0 : i32
    %c0_i32_0 = arith.constant 0 : i32
    %c0_i32_1 = arith.constant 0 : i32
    return %c0_i32, %c0_i32_0 : i32, i32
  }
  func.func @transform_2(%arg0: i32, %arg1: memref<2xi32, #tpu.memory_space<smem>>) -> (i32, i32) {
    %c0_i32 = arith.constant 0 : i32
    %c0_i32_0 = arith.constant 0 : i32
    %c0_i32_1 = arith.constant 0 : i32
    return %c0_i32, %c0_i32_0 : i32, i32
  }
  func.func @transform_3(%arg0: i32, %arg1: memref<2xi32, #tpu.memory_space<smem>>) -> (i32, i32) {
    %c0_i32 = arith.constant 0 : i32
    %c0_i32_0 = arith.constant 0 : i32
    %c0_i32_1 = arith.constant 0 : i32
    return %c0_i32, %c0_i32_0 : i32, i32
  }
  func.func @transform_4(%arg0: i32, %arg1: memref<2xi32, #tpu.memory_space<smem>>) -> (i32, i32) {
    %c0_i32 = arith.constant 0 : i32
    %c0_i32_0 = arith.constant 0 : i32
    %c0_i32_1 = arith.constant 0 : i32
    return %c0_i32, %c0_i32_0 : i32, i32
  }
  func.func @transform_5(%arg0: i32, %arg1: memref<2xi32, #tpu.memory_space<smem>>) -> (i32, i32, i32) {
    %c0_i32 = arith.constant 0 : i32
    %c0_i32_0 = arith.constant 0 : i32
    %c0_i32_1 = arith.constant 0 : i32
    %c0_i32_2 = arith.constant 0 : i32
    return %c0_i32, %c0_i32_0, %c0_i32_1 : i32, i32, i32
  }
  func.func @transform_6(%arg0: i32, %arg1: memref<2xi32, #tpu.memory_space<smem>>) -> (i32, i32, i32) {
    %c0_i32 = arith.constant 0 : i32
    %c0_i32_0 = arith.constant 0 : i32
    %c0_i32_1 = arith.constant 0 : i32
    %c0_i32_2 = arith.constant 0 : i32
    return %c0_i32, %c0_i32_0, %c0_i32_1 : i32, i32, i32
  }
  func.func @transform_7(%arg0: i32, %arg1: memref<2xi32, #tpu.memory_space<smem>>) -> (i32, i32, i32) {
    %c0_i32 = arith.constant 0 : i32
    %c0_i32_0 = arith.constant 0 : i32
    %c0_i32_1 = arith.constant 0 : i32
    %c0_i32_2 = arith.constant 0 : i32
    return %c0_i32, %c0_i32_0, %c0_i32_1 : i32, i32, i32
  }
  func.func @transform_8(%arg0: i32, %arg1: memref<2xi32, #tpu.memory_space<smem>>) -> (i32, i32, i32) {
    %c0_i32 = arith.constant 0 : i32
    %c0_i32_0 = arith.constant 0 : i32
    %c0_i32_1 = arith.constant 0 : i32
    %c0_i32_2 = arith.constant 0 : i32
    return %c0_i32, %c0_i32_0, %c0_i32_1 : i32, i32, i32
  }
  func.func @transform_9(%arg0: i32, %arg1: memref<2xi32, #tpu.memory_space<smem>>) -> (i32, i32, i32) {
    %c0_i32 = arith.constant 0 : i32
    %c0_i32_0 = arith.constant 0 : i32
    %c0_i32_1 = arith.constant 0 : i32
    %c0_i32_2 = arith.constant 0 : i32
    return %c0_i32, %c0_i32_0, %c0_i32_1 : i32, i32, i32
  }
  func.func @transform_10(%arg0: i32, %arg1: memref<2xi32, #tpu.memory_space<smem>>) -> (i32, i32, i32) {
    %c0_i32 = arith.constant 0 : i32
    %c0_i32_0 = arith.constant 0 : i32
    %c0_i32_1 = arith.constant 0 : i32
    %c0_i32_2 = arith.constant 0 : i32
    return %c0_i32, %c0_i32_0, %c0_i32_1 : i32, i32, i32
  }
  func.func @transform_11(%arg0: i32, %arg1: memref<2xi32, #tpu.memory_space<smem>>) -> (i32, i32) {
    %c0_i32 = arith.constant 0 : i32
    %c0_i32_0 = arith.constant 0 : i32
    %c0_i32_1 = arith.constant 0 : i32
    return %c0_i32, %c0_i32_0 : i32, i32
  }
  func.func @transform_12(%arg0: i32, %arg1: memref<2xi32, #tpu.memory_space<smem>>) -> (i32, i32) {
    %c0_i32 = arith.constant 0 : i32
    %c0_i32_0 = arith.constant 0 : i32
    %c0_i32_1 = arith.constant 0 : i32
    return %c0_i32, %c0_i32_0 : i32, i32
  }
  func.func @transform_13(%arg0: i32, %arg1: memref<2xi32, #tpu.memory_space<smem>>) -> (i32, i32, i32, i32) {
    %c0_i32 = arith.constant 0 : i32
    %c0_i32_0 = arith.constant 0 : i32
    %c0_i32_1 = arith.constant 0 : i32
    %c0_i32_2 = arith.constant 0 : i32
    return %c0_i32, %arg0, %c0_i32_0, %c0_i32_1 : i32, i32, i32, i32
  }
  func.func @transform_14(%arg0: i32, %arg1: memref<2xi32, #tpu.memory_space<smem>>) -> (i32, i32, i32, i32) {
    %c0_i32 = arith.constant 0 : i32
    %c0_i32_0 = arith.constant 0 : i32
    %c0_i32_1 = arith.constant 0 : i32
    %c0_i32_2 = arith.constant 0 : i32
    return %c0_i32, %arg0, %c0_i32_0, %c0_i32_1 : i32, i32, i32, i32
  }
  func.func @transform_15(%arg0: i32, %arg1: memref<2xi32, #tpu.memory_space<smem>>) -> (i32, i32, i32) {
    %c0_i32 = arith.constant 0 : i32
    %c0_i32_0 = arith.constant 0 : i32
    %c0_i32_1 = arith.constant 0 : i32
    return %arg0, %c0_i32, %c0_i32_0 : i32, i32, i32
  }
  func.func @transform_16(%arg0: i32, %arg1: memref<2xi32, #tpu.memory_space<smem>>) -> (i32, i32, i32, i32) {
    %c0_i32 = arith.constant 0 : i32
    %c0_i32_0 = arith.constant 0 : i32
    %c0_i32_1 = arith.constant 0 : i32
    %c0_i32_2 = arith.constant 0 : i32
    return %c0_i32, %arg0, %c0_i32_0, %c0_i32_1 : i32, i32, i32, i32
  }
  func.func @transform_17(%arg0: i32, %arg1: memref<2xi32, #tpu.memory_space<smem>>) -> (i32, i32, i32, i32) {
    %c0_i32 = arith.constant 0 : i32
    %c0_i32_0 = arith.constant 0 : i32
    %c0_i32_1 = arith.constant 0 : i32
    %c0_i32_2 = arith.constant 0 : i32
    return %c0_i32, %arg0, %c0_i32_0, %c0_i32_1 : i32, i32, i32, i32
  }
}

</mosaic_0001>

<bundles_post_ra>
// kernel: tile.18
= control target key start
LH: loop header
LB: loop body
LE: loop exit
PB: predicated region body
PF: predicated region fallthrough
CT: control target
= control target key end

     0   :  { %vm4_vm0 = vcmask 1047556   ;;  %s73_s14 = smov 80   ;;  %s74_s19 = smov 48   ;;  %vm6_vm1 = vcmask 130048   ;;  %vm16_vm2 = vcmask 786048   ;;  %vm26_vm3 = vcmask 654848   ;;  %s148_s0 = inlined_call_operand.vmem [shape: f32[8,6,16], index: 0, kind: input, shape index: {}]   ;;  %s149_s1 = inlined_call_operand.vmem [shape: f32[8,96], index: 1, kind: output, shape index: {}]  }
   0x1   :  { %v58_v0 = vld [vmem:[%s148_s0 + $0x5] ss:$8 sm:$0xf]   ;;  %v62_v3 = vld [vmem:[%s148_s0 + $0x3] ss:$8 sm:$0xf]  }
   0x2   :  { %v59_v1 = vld [vmem:[%s148_s0 + $0x5] ss:$8 sm:$0xf0]   ;;  %v63_v4 = vld [vmem:[%s148_s0 + $0x3] ss:$8 sm:$0xf0]  }
   0x3   :  { %v13_v2 = vsel %vm4_vm0, %v59_v1, %v58_v0  ;;  %v33_v5 = vsel %vm4_vm0, %v63_v4, %v62_v3  ;;  %v60_v6 = vld [vmem:[%s148_s0 + $0x4] ss:$8 sm:$0xf]   ;;  %v64_v9 = vld [vmem:[%s148_s0 + $0x2] ss:$8 sm:$0xf]  }
   0x4   :  { %14 = vrot.lane.b32.xlu0 %v13_v2, %s73_s14  ;;  %v61_v7 = vld [vmem:[%s148_s0 + $0x4] ss:$8 sm:$0xf0]   ;;  %34 = vrot.lane.b32.xlu1 %v33_v5, %s74_s19  ;;  %v65_v10 = vld [vmem:[%s148_s0 + $0x2] ss:$8 sm:$0xf0]  }
   0x5   :  { %v23_v8 = vsel %vm4_vm0, %v61_v7, %v60_v6  ;;  %v66_v11 = vld [vmem:[%s148_s0 + $0x1] ss:$8 sm:$0xf]   ;;  %v43_v12 = vsel %vm4_vm0, %v65_v10, %v64_v9  ;;  %s75_s28 = smov 64   ;;  %s77_s6 = smov 16   ;;  %vm36_vm4 = vcmask 523648  }
   0x6   :  { %v67_v13 = vld [vmem:[%s148_s0 + $0x1] ss:$8 sm:$0xf0]   ;;  %v2_v14 = vld [vmem:[%s148_s0] ss:$8 sm:$0xf]  }
   0x7   :  { %v3_v15 = vld [vmem:[%s148_s0] ss:$8 sm:$0xf0]   ;;  %s76_s0 = smov 32   ;;  %v53_v16 = vsel %vm4_vm0, %v67_v13, %v66_v11  ;;  %vm46_vm5 = vcmask 392448   ;;  %vm56_vm6 = vcmask 261248  }
   0x8   :  { %24 = vrot.lane.b32.xlu0 %v23_v8, %s75_s28  ;;  %44 = vrot.lane.b32.xlu1 %v43_v12, %s76_s0  ;;  %v5_v17 = vsel %vm4_vm0, %v3_v15, %v2_v14 }
   0x9   :  { %7 = vst.msk [vmem:[%s149_s1] sm:$0xff] %vm6_vm1, %v5_v17  }
   0xc   :  { %54 = vrot.lane.b32.xlu0 %v53_v16, %s77_s6 }
  0x76   :  { %v15_v18 = vpop.permute.xlu0 %14   ;;  %v35_v19 = vpop.permute.xlu1 %34  }
  0x77   :  { %17 = vst.msk [vmem:[%s149_s1] sm:$0xff] %vm16_vm2, %v15_v18  }
  0x7a   :  { %v25_v20 = vpop.permute.xlu0 %24   ;;  %v45_v21 = vpop.permute.xlu1 %44  }
  0x7b   :  { %27 = vst.msk [vmem:[%s149_s1] sm:$0xff] %vm26_vm3, %v25_v20  }
  0x7c   :  { %37 = vst.msk [vmem:[%s149_s1] sm:$0xff] %vm36_vm4, %v35_v19  }
  0x7d   :  { %47 = vst.msk [vmem:[%s149_s1] sm:$0xff] %vm46_vm5, %v45_v21  }
  0x7e   :  { %v55_v22 = vpop.permute.xlu0 %54  }
  0x7f   :  { %57 = vst.msk [vmem:[%s149_s1] sm:$0xff] %vm56_vm6, %v55_v22  }

// kernel: gemma_forward.1
= control target key start
LH: loop header
LB: loop body
LE: loop exit
PB: predicated region body
PF: predicated region fallthrough
CT: control target
= control target key end

     0   :  { %s4778_s0 = inlined_call_operand.vmem [shape: s32[2], index: 0, kind: input, shape index: {}]   ;;  %s4779_s1 = inlined_call_operand.vmem [shape: f32[2,8,32], index: 1, kind: input, shape index: {}]   ;;  %s4780_s2 = inlined_call_operand.vmem [shape: f32[8,128], index: 2, kind: input, shape index: {}]   ;;  %s4781_s3 = inlined_call_operand.vmem [shape: f32[8,128], index: 3, kind: input, shape index: {}]   ;;  %s4782_s4 = inlined_call_operand.vmem [shape: f32[128,128], index: 4, kind: input, shape index: {}]   ;;  %s4783_s5 = inlined_call_operand.vmem [shape: f32[16,32], index: 5, kind: input, shape index: {}]   ;;  %s4784_s6 = inlined_call_operand.vmem [shape: f32[2,32,128], index: 6, kind: input, shape index: {}]   ;;  %s4785_s7 = inlined_call_operand.vmem [shape: f32[2,64,32], index: 7, kind: input, shape index: {}]   ;;  %s4786_s8 = inlined_call_operand.vmem [shape: f32[2,32,128], index: 8, kind: input, shape index: {}]   ;;  %s4787_s9 = inlined_call_operand.vmem [shape: f32[2,64,32], index: 9, kind: input, shape index: {}]   ;;  %s4788_s10 = inlined_call_operand.vmem [shape: f32[2,1,32], index: 10, kind: input, shape index: {}]   ;;  %s4789_s11 = inlined_call_operand.vmem [shape: f32[2,1,32], index: 11, kind: input, shape index: {}]   ;;  %s4790_s12 = inlined_call_operand.vmem [shape: f32[1,32], index: 12, kind: input, shape index: {}]   ;;  %s4791_s13 = inlined_call_operand.vmem [shape: f32[32,128], index: 13, kind: input, shape index: {}]   ;;  %s4792_s14 = inlined_call_operand.vmem [shape: f32[2,2,32,32], index: 14, kind: input, shape index: {}, may-alias: {14,17}]   ;;  %s4793_s15 = inlined_call_operand.vmem [shape: f32[2,2,32,32], index: 15, kind: input, shape index: {}, may-alias: {15,18}]   ;;  %s4794_s16 = inlined_call_operand.vmem [shape: f32[2,1,128], index: 16, kind: output, shape index: {0}]   ;;  %s4795_s17 = inlined_call_operand.vmem [shape: f32[2,2,32,32], index: 17, kind: output, shape index: {1}, may-alias: {14,17}]   ;;  %s4796_s18 = inlined_call_operand.vmem [shape: f32[2,2,32,32], index: 18, kind: output, shape index: {2}, may-alias: {15,18}]  }
   0x1   :  { %4807 = sst [smem:[#allocation9_spill]] %s4778_s0 }
   0x2   :  { %4808 = sst [smem:[#allocation10_spill]] %s4779_s1  ;;  %s4815_s29 = sld [smem:[#allocation9_spill]] }
   0x3   :  { %4809 = sst [smem:[#allocation11_spill]] %s4780_s2 }
   0x4   :  { %4810 = sst [smem:[#allocation12_spill]] %s4781_s3 }
   0x5   :  { %4811 = sst [smem:[#allocation13_spill]] %s4782_s4 }
   0x6   :  { %4812 = sst [smem:[#allocation14_spill]] %s4783_s5 }
   0x7   :  { %4813 = sst [smem:[#allocation15_spill]] %s4790_s12 }
   0x8   :  { %4814 = sst [smem:[#allocation16_spill]] %s4792_s14  ;;  %s24_s12 = sshll.u32 %s4815_s29, 4  ;;  %s25_s12 = int_to_ptr.vmem [resolvable:$true] %s24_s12 }
   0x9   :  { %s3908_s30 = scalar_lea.vmem %s25_s12, 16  ;;  %p3913_p1 = scmp.lt.s32.totalorder %s25_s12, %s25_s12 }
   0xa   :  { %p3909_p0 = scmp.ne.s32.totalorder %s25_s12, %s3908_s30  ;;  %p3914_p2 = scmp.lt.s32.totalorder %s3908_s30, %s3908_s30 }
   0xc   :  { %p3915_p3 = por %p3914_p2, %p3913_p1 }
   0xe   :  { %p3916_p4 = pnand %p3915_p3, %p3909_p0 }
  0x10   :  { %3919 = shalt.err (!%p3916_p4)  }
  0x11   :  { %s3946_s0 = smov [#allocation3]  }
  0x12   :  { %27 = dma.vmem_to_smem %s25_s12, 16, %s3946_s0, [#allocation2] }
  0x13   :  { %3932 = dma.done.wait [#allocation2], 16 }
  0x14   :  { %3933 = vsyncadd [#allocation2], 4294967280 }
  0x15   :  { %29 = sfence }
  0x16   :  { %s4054_s19 = smov 0   ;;  %s4056_s1 = smov 0  }
  0x17   :  { %s4058_s20 = smov 0  }
  0x18 LB: > { %s4070_s12 = sadd.s32 4294967295, %s3944_s20   ;;  %s4073_s21 = sadd.s32 1, %s3944_s20   ;;  %s3944_s20 = sphi %s4058_s20, %s4835_s20   ;;  %s3940_s1 = sphi %s4056_s1, %s4834_s1   ;;  %s3936_s19 = sphi %s4054_s19, %s4833_s19  }
  0x19   : > { %s317_s22 = ssub.s32 %s3944_s20, %s4073_s21  ;;  %s320_s2 = sadd.s32 1, %s3940_s1 }
  0x1a   : > { %p318_p5 = scmp.eq.s32.totalorder %s317_s22, 0  ;;  %p327_p6 = scmp.ne.s32.totalorder %s3940_s1, %s3936_s19 }
  0x1b   : > { %p328_p7 = scmp.eq.s32.totalorder %s3944_s20, 0  ;;  %p409_p8 = scmp.eq.s32.totalorder %s4070_s12, 1 }
  0x1c   : > { %s4083_s23 = scalar_select %p318_p5, %s3940_s1, %s320_s2  }
  0x1d   : > { %p4085_p9 = por %p328_p7, %p327_p6  ;;  %p4089_p10 = por %p409_p8, %p327_p6 }
  0x1e   : > { %p3038_p11 = scmp.ge.s32.totalorder %s3944_s20, 2 }
  0x20   : > { %493 = sbr.rel (%p3038_p11) target bundleno = 61 (0x3d), region = 64 }
  0x27   : > { %503 = sbr.rel (!%p4085_p9) target bundleno = 53 (0x35), region = 72  ;;  %s505_s26 = sand.u32 (%p4085_p9), 1, %s3940_s1  }
  0x28   : > { %s3139_s27 = sshll.u32 (%p4085_p9), %s3944_s20, 5  ;;  %s3039_s28 = sshll.u32 (%p4085_p9), %s505_s26, 6 }
  0x29   : > { %s4818_s14 = sld [smem:[#allocation16_spill]] (%p4085_p9)  ;;  %s507_s22 = scalar_lea.vmem (%p4085_p9), [#allocation4], %s3039_s28 }
  0x2f   : > { %s510_s0 = scalar_lea.vmem %s4818_s14, %s3139_s27 }
  0x30   : > { %v552_v0 = vld [vmem:[%s510_s0] sm:$0xff]  ;;  %v554_v1 = vld [vmem:[%s510_s0 + $0x8] sm:$0xff]  ;;  %v556_v2 = vld [vmem:[%s510_s0 + $0x10] sm:$0xff] }
  0x31   : > { %553 = vst [vmem:[%s507_s22] sm:$0xff] %v552_v0  ;;  %555 = vst [vmem:[%s507_s22 + $0x8] sm:$0xff] %v554_v1  ;;  %v558_v3 = vld [vmem:[%s510_s0 + $0x18] sm:$0xff]  ;;  %v560_v4 = vld [vmem:[%s510_s0 + $0x40] sm:$0xff] }
  0x32   : > { %557 = vst [vmem:[%s507_s22 + $0x10] sm:$0xff] %v556_v2  ;;  %v562_v5 = vld [vmem:[%s510_s0 + $0x48] sm:$0xff]  ;;  %559 = vst [vmem:[%s507_s22 + $0x18] sm:$0xff] %v558_v3  ;;  %v564_v6 = vld [vmem:[%s510_s0 + $0x50] sm:$0xff] }
  0x33   : > { %561 = vst [vmem:[%s507_s22 + $0x20] sm:$0xff] %v560_v4  ;;  %563 = vst [vmem:[%s507_s22 + $0x28] sm:$0xff] %v562_v5  ;;  %v566_v7 = vld [vmem:[%s510_s0 + $0x58] sm:$0xff] }
  0x34   : > { %565 = vst [vmem:[%s507_s22 + $0x30] sm:$0xff] %v564_v6  ;;  %567 = vst [vmem:[%s507_s22 + $0x38] sm:$0xff] %v566_v7 }
  0x35 PF: > { %573 = sbr.rel (!%p4085_p9) target bundleno = 61 (0x3d), region = 110  ;;  %s575_s2 = sand.u32 (%p4085_p9), 1, %s3940_s1  }
  0x36   : > { %s3140_s26 = sshll.u32 (%p4085_p9), %s3944_s20, 5  ;;  %s3042_s27 = sshll.u32 (%p4085_p9), %s575_s2, 6 }
  0x37   : > { %s580_s30 = scalar_lea.vmem (%p4085_p9), %s4793_s15, %s3140_s26  ;;  %s577_s14 = scalar_lea.vmem (%p4085_p9), [#allocation5], %s3042_s27 }
  0x38   : > { %v622_v8 = vld [vmem:[%s580_s30] sm:$0xff] (%p4085_p9)  ;;  %v624_v9 = vld [vmem:[%s580_s30 + $0x8] sm:$0xff] (%p4085_p9)  ;;  %v626_v10 = vld [vmem:[%s580_s30 + $0x10] sm:$0xff] (%p4085_p9) }
  0x39   : > { %623 = vst [vmem:[%s577_s14] sm:$0xff] (%p4085_p9), %v622_v8  ;;  %625 = vst [vmem:[%s577_s14 + $0x8] sm:$0xff] (%p4085_p9), %v624_v9  ;;  %v628_v11 = vld [vmem:[%s580_s30 + $0x18] sm:$0xff] (%p4085_p9)  ;;  %v630_v12 = vld [vmem:[%s580_s30 + $0x40] sm:$0xff] (%p4085_p9) }
  0x3a   : > { %627 = vst [vmem:[%s577_s14 + $0x10] sm:$0xff] (%p4085_p9), %v626_v10  ;;  %v632_v13 = vld [vmem:[%s580_s30 + $0x48] sm:$0xff] (%p4085_p9)  ;;  %629 = vst [vmem:[%s577_s14 + $0x18] sm:$0xff] (%p4085_p9), %v628_v11  ;;  %v634_v14 = vld [vmem:[%s580_s30 + $0x50] sm:$0xff] (%p4085_p9) }
  0x3b   : > { %631 = vst [vmem:[%s577_s14 + $0x20] sm:$0xff] (%p4085_p9), %v630_v12  ;;  %633 = vst [vmem:[%s577_s14 + $0x28] sm:$0xff] (%p4085_p9), %v632_v13  ;;  %v636_v15 = vld [vmem:[%s580_s30 + $0x58] sm:$0xff] (%p4085_p9) }
  0x3c   : > { %635 = vst [vmem:[%s577_s14 + $0x30] sm:$0xff] %v634_v14  ;;  %637 = vst [vmem:[%s577_s14 + $0x38] sm:$0xff] %v636_v15 }
  0x3d PF: > { %p3045_p12 = scmp.ge.s32.totalorder %s3944_s20, 1  ;;  %p642_p13 = scmp.lt.s32.totalorder %s3944_s20, 3 }
  0x3f   : > { %p643_p0 = pnand %p3045_p12, %p642_p13 }
  0x40   : > { %p721_p1 = scmp.lt.s32.totalorder (!%p643_p0), %s4070_s12, 1  ;;  %s4819_s26 = sld [smem:[#allocation10_spill]] (!%p643_p0)  ;;  %vm758_vm0 = vcmask (!%p643_p0), 261120   ;;  %v803_v20 = vld [vmem:[%s4784_s6] sm:$0xff] (!%p643_p0)  ;;  %v804_v21 = vld [vmem:[%s4784_s6 + $0x8] sm:$0xff] (!%p643_p0)  ;;  %v805_v22 = vld [vmem:[%s4784_s6 + $0x10] sm:$0xff] (!%p643_p0)  ;;  %v797_v54 = vlaneseq (!%p643_p0) }
  0x41   : > { %646 = sbr.rel (%p643_p0) target bundleno = 6828 (0x1aac), region = 148  ;;  %v3947_v23 = vmov (!%p643_p0), 0.0|0.0   ;;  %v3583_v24 = vpack.c.bf16 (!%p643_p0), %v804_v21, %v803_v20  ;;  %v806_v25 = vld [vmem:[%s4784_s6 + $0x18] sm:$0xff] (!%p643_p0)  ;;  %vm3948_vm1 = vmmov (!%p643_p0), 0   ;;  %v3949_v26 = vmov (!%p643_p0), 0.0   ;;  %s4820_s4 = sld [smem:[#allocation13_spill]] (!%p643_p0) }
  0x42   : > { %3582 = vmatprep.subr.bf16.mxu0 (!%p643_p0), %v3947_v23  ;;  %3296 = vmatprep.mubr.msk.f32.mxu0 (!%p643_p0), %vm3948_vm1, %v3949_v26  ;;  %v3586_v27 = vpack.c.bf16 (!%p643_p0), %v806_v25, %v805_v22  ;;  %v798_v56 = vshrl.u32 (!%p643_p0), %v797_v54, 7  ;;  %v785_v57 = vld [vmem:[%s4788_s10] sm:$0x1] (!%p643_p0)  ;;  %s649_s28 = sand.u32 (!%p643_p0), 1, %s3936_s19   ;;  %s4821_s2 = sld [smem:[#allocation11_spill]] (!%p643_p0)  ;;  %vm974_vm2 = vcmask (!%p643_p0), 130048  }
  0x43   : > { %3588 = vmatprep.subr.bf16.mxu1 (!%p643_p0), %v3947_v23  ;;  %3331 = vmatprep.mubr.msk.f32.mxu1 (!%p643_p0), %vm3948_vm1, %v3949_v26  ;;  %v795_v58 = vadd.f32 (!%p643_p0), 1.0, %v785_v57  ;;  %s4231_s29 = sshll.u32 (!%p643_p0), %s649_s28, 6  ;;  %s4822_s3 = sld [smem:[#allocation12_spill]] (!%p643_p0)  ;;  %vm4283_vm3 = vmpackc.low (!%p643_p0), %vm974_vm2, %vm974_vm2  ;;  %vm1409_vm4 = vcmask (!%p643_p0), 392192   ;;  %vm1419_vm5 = vcmask (!%p643_p0), 523264   ;;  %vm2586_vm7 = vcmask (!%p643_p0), 64512  }
  0x44   : > { %3584 = vmatpush3.bf16.msra.mxu0 (!%p643_p0), %v3583_v24  ;;  %v4225_v59 = vsub.s32 (!%p643_p0), 0, %v798_v56  ;;  %s651_s30 = scalar_lea.vmem (!%p643_p0), [#allocation4], %s4231_s29  ;;  %s4800_s14 = smov (!%p643_p0), 112   ;;  %vm2662_vm8 = vcmask (!%p643_p0), 253952  }
  0x45   : > { %3585 = vmatprep.subr.bf16.mxu0 (!%p643_p0), %v3947_v23  ;;  %v750_v2 = vld [vmem:[%s651_s30] sm:$0xff] (!%p643_p0)  ;;  %v751_v3 = vld [vmem:[%s651_s30 + $0x8] sm:$0xff] (!%p643_p0)  ;;  %v752_v4 = vld [vmem:[%s651_s30 + $0x10] sm:$0xff] (!%p643_p0)  ;;  %s4802_s20 = smov (!%p643_p0), 64   ;;  %s4273_s28 = sld [smem:[#allocation3]] (!%p643_p0) }
  0x46   : > { %v800_v60 = vrot.slane (!%p643_p0), %v795_v58, %v4225_v59  ;;  %v753_v5 = vld [vmem:[%s651_s30 + $0x18] sm:$0xff] (!%p643_p0)  ;;  %v754_v6 = vld [vmem:[%s651_s30 + $0x20] sm:$0xff] (!%p643_p0)  ;;  %v755_v7 = vld [vmem:[%s651_s30 + $0x28] sm:$0xff] (!%p643_p0)  ;;  %s4825_s5 = sld [smem:[#allocation14_spill]] (!%p643_p0)  ;;  %s658_s19 = scalar_lea.vmem (!%p643_p0), [#allocation5], %s4231_s29 }
  0x47   : > { %v732_v28 = vld [vmem:[%s4820_s4] sm:$0xff] (!%p643_p0)  ;;  %v733_v29 = vld [vmem:[%s4820_s4 + $0x8] sm:$0xff] (!%p643_p0)  ;;  %v734_v30 = vld [vmem:[%s4820_s4 + $0x10] sm:$0xff] (!%p643_p0)  ;;  %s4327_s22 = scalar_lea.vmem (!%p643_p0), [#allocation7], %s4231_s29 }
  0x48   : > { %s4112_s24 = scalar_select %p721_p1, %s4070_s12, 1  ;;  %3587 = vmatpush3.bf16.msra.mxu0 %v3586_v27  ;;  %v4151_v31 = vpack.c.bf16 %v733_v29, %v732_v28  ;;  %v735_v32 = vld [vmem:[%s4820_s4 + $0x18] sm:$0xff]  ;;  %v736_v34 = vld [vmem:[%s4820_s4 + $0x20] sm:$0xff]  ;;  %v737_v35 = vld [vmem:[%s4820_s4 + $0x28] sm:$0xff] }
  0x49   : > { %v4157_v33 = vpack.c.bf16 %v735_v32, %v734_v30  ;;  %v4167_v36 = vpack.c.bf16 %v737_v35, %v736_v34  ;;  %v738_v37 = vld [vmem:[%s4820_s4 + $0x30] sm:$0xff]  ;;  %v739_v38 = vld [vmem:[%s4820_s4 + $0x38] sm:$0xff]  ;;  %v740_v40 = vld [vmem:[%s4820_s4 + $0x40] sm:$0xff] }
  0x4a   : > { %s3050_s0 = sshll.u32 %s4112_s24, 3  ;;  %3590 = vmatpush3.bf16.msra.mxu1 %v4151_v31  ;;  %v4177_v39 = vpack.c.bf16 %v739_v38, %v738_v37  ;;  %v741_v41 = vld [vmem:[%s4820_s4 + $0x48] sm:$0xff]  ;;  %v742_v43 = vld [vmem:[%s4820_s4 + $0x50] sm:$0xff]  ;;  %v743_v44 = vld [vmem:[%s4820_s4 + $0x58] sm:$0xff] }
  0x4b   : > { %s724_s27 = scalar_lea.vmem %s4819_s26, %s3050_s0  ;;  %3591 = vmatprep.subr.bf16.mxu1 %v3947_v23  ;;  %v4187_v42 = vpack.c.bf16 %v741_v41, %v740_v40  ;;  %v4197_v45 = vpack.c.bf16 %v743_v44, %v742_v43  ;;  %v744_v46 = vld [vmem:[%s4820_s4 + $0x60] sm:$0xff]  ;;  %v745_v47 = vld [vmem:[%s4820_s4 + $0x68] sm:$0xff]  ;;  %v746_v49 = vld [vmem:[%s4820_s4 + $0x70] sm:$0xff]  ;;  %s4235_s0 = scalar_lea.vmem [#allocation6], %s4231_s29 }
  0x4c   : > { %v783_v16 = vld [vmem:[%s724_s27] sm:$0xff]  ;;  %v4207_v48 = vpack.c.bf16 %v745_v47, %v744_v46  ;;  %v747_v50 = vld [vmem:[%s4820_s4 + $0x78] sm:$0xff]  ;;  %759 = vst.msk [vmem:[%s4235_s0] sm:$0xff] %vm758_vm0, %v750_v2  ;;  %760 = vst.msk [vmem:[%s4235_s0 + $0x8] sm:$0xff] %vm758_vm0, %v751_v3  ;;  %s4804_s27 = smov 32   ;;  %s4348_s29 = scalar_lea.vmem %s4327_s22, %s4273_s28 [#allocation7] }
  0x4d   : > { %v4118_v17 = vmul.f32 5.656854, %v783_v16  ;;  %v4217_v51 = vpack.c.bf16 %v747_v50, %v746_v49  ;;  %761 = vst.msk [vmem:[%s4235_s0 + $0x10] sm:$0xff] %vm758_vm0, %v752_v4  ;;  %v756_v8 = vld [vmem:[%s651_s30 + $0x30] sm:$0xff]  ;;  %v757_v9 = vld [vmem:[%s651_s30 + $0x38] sm:$0xff]  ;;  %762 = vst.msk [vmem:[%s4235_s0 + $0x18] sm:$0xff] %vm758_vm0, %v753_v5  ;;  %s4277_s30 = scalar_lea.vmem %s4235_s0, %s4273_s28 [#allocation6] }
  0x4e   : > { %3593 = vmatpush3.bf16.msra.mxu1 %v4157_v33  ;;  %763 = vst.msk [vmem:[%s4235_s0 + $0x20] sm:$0xff] %vm758_vm0, %v754_v6  ;;  %764 = vst.msk [vmem:[%s4235_s0 + $0x28] sm:$0xff] %vm758_vm0, %v755_v7  ;;  %v4256_v10 = vld [vmem:[%s4821_s2] sm:$0xff]  ;;  %v4312_v30 = vld [vmem:[%s4825_s5 + $0x8] sm:$0xff]  ;;  %s4798_s28 = smov 96   ;;  %s4797_s2 = smov 16  }
  0x4f   : > { %v786_v18 = vmul.f32 %v4118_v17, %v4118_v17  ;;  %3594 = vmatprep.subr.bf16.mxu1 %v3947_v23  ;;  %765 = vst.msk [vmem:[%s4235_s0 + $0x30] sm:$0xff] %vm758_vm0, %v756_v8  ;;  %766 = vst.msk [vmem:[%s4235_s0 + $0x38] sm:$0xff] %vm758_vm0, %v757_v9  ;;  %v4261_v11 = vld [vmem:[%s4822_s3] sm:$0xff]  ;;  %v768_v46 = vld [vmem:[%s658_s19 + $0x8] sm:$0xff]  ;;  %s4806_s4 = smov 48   ;;  %s3051_s3 = sld [smem:[#allocation3 + $0x1]] }
  0x50   : > { %v4317_v35 = vld [vmem:[%s4825_s5] sm:$0xff]  ;;  %v769_v47 = vld [vmem:[%s658_s19 + $0x10] sm:$0xff]  ;;  %v770_v49 = vld [vmem:[%s658_s19 + $0x18] sm:$0xff]  ;;  %776 = vst.msk [vmem:[%s4327_s22 + $0x8] sm:$0xff] %vm758_vm0, %v768_v46  ;;  %s4827_s5 = smov 64  }
  0x51   : > { %v787_v19 = vsel %vm758_vm0, %v786_v18, 0.0  ;;  %v767_v44 = vld [vmem:[%s658_s19] sm:$0xff]  ;;  %777 = vst.msk [vmem:[%s4327_s22 + $0x10] sm:$0xff] %vm758_vm0, %v769_v47  ;;  %v774_v56 = vld [vmem:[%s658_s19 + $0x38] sm:$0xff]  ;;  %778 = vst.msk [vmem:[%s4327_s22 + $0x18] sm:$0xff] %vm758_vm0, %v770_v49 }
  0x52   : > { %788 = vadd.xlane.f32.xlu0 %v787_v19  ;;  %3596 = vmatpush3.bf16.msra.mxu1 %v4167_v36  ;;  %v771_v50 = vld [vmem:[%s658_s19 + $0x20] sm:$0xff]  ;;  %775 = vst.msk [vmem:[%s4327_s22] sm:$0xff] %vm758_vm0, %v767_v44  ;;  %782 = vst.msk [vmem:[%s4327_s22 + $0x38] sm:$0xff] %vm758_vm0, %v774_v56 }
  0x53   : > { %3597 = vmatprep.subr.bf16.mxu1 %v3947_v23  ;;  %779 = vst.msk [vmem:[%s4327_s22 + $0x20] sm:$0xff] %vm758_vm0, %v771_v50 }
  0x56   : > { %3599 = vmatpush3.bf16.msra.mxu1 %v4177_v39 }
  0x57   : > { %3600 = vmatprep.subr.bf16.mxu1 %v3947_v23 }
  0x5a   : > { %3602 = vmatpush3.bf16.msra.mxu1 %v4187_v42 }
  0x5b   : > { %3603 = vmatprep.subr.bf16.mxu1 %v3947_v23 }
  0x5e   : > { %3605 = vmatpush3.bf16.msra.mxu1 %v4197_v45 }
  0x5f   : > { %3606 = vmatprep.subr.bf16.mxu1 %v3947_v23 }
  0x62   : > { %3608 = vmatpush3.bf16.msra.mxu1 %v4207_v48 }
  0x63   : > { %3609 = vmatprep.subr.bf16.mxu1 %v3947_v23 }
  0x66   : > { %3611 = vmatpush3.bf16.msra.mxu1 %v4217_v51 }
  0xdf   : > { %v789_v52 = vpop.xlane.xlu0 %788 }
  0xe0   : > { %v791_v53 = vmul.f32 0.03125, %v789_v52  ;;  %v772_v52 = vld [vmem:[%s658_s19 + $0x28] sm:$0xff] }
  0xe1   : > { %780 = vst.msk [vmem:[%s4327_s22 + $0x28] sm:$0xff] %vm758_vm0, %v772_v52 }
  0xe2   : > { %v792_v55 = vadd.f32 1e-06, %v791_v53 }
  0xe4   : > { %3862 = vrsqrt.f32 %v792_v55  ;;  %v773_v55 = vld [vmem:[%s658_s19 + $0x30] sm:$0xff] }
  0xe5   : > { %781 = vst.msk [vmem:[%s4327_s22 + $0x30] sm:$0xff] %vm758_vm0, %v773_v55 }
  0xee   : > { %v3863_v61 = vpop.eup %3862 }
  0xef   : > { %v794_v62 = vmul.f32 %v3863_v61, %v4118_v17 }
  0xf1   : > { %v802_v63 = vmul.f32 %v800_v60, %v794_v62 }
  0xf3   : > { %3297 = vmatmul.mubr.msk.f32.vlgmr.msra.gmra.mrb[0].mxu0 %vm758_vm0, %v802_v63 }
 0x1c6   : > { %v876_v0 = vpop.f32.mrb[0].mxu0 }
 0x1c7   : > { %v3298_v1 = vpop.f32.mrb[1].mxu0  ;;  %3332 = vmatmul.mubr.f32.vlgmr.msra.gmra.mrb[0].mxu1 %v876_v0  ;;  %v880_v13 = vmul.f32 %v876_v0, %v4256_v10 }
 0x29a   : > { %v947_v12 = vpop.f32.mrb[0].mxu1 }
 0x29b   : > { %v951_v14 = vmul.f32 %v947_v12, %v4261_v11  ;;  %v3333_v15 = vpop.f32.mrb[1].mxu1 }
 0x29d   : > { %v4265_v16 = vadd.f32 %v951_v14, %v880_v13 }
 0x29f   : > { %972 = vrot.lane.b32.xlu1 %v4265_v16, %s4800_s14  ;;  %954 = vrot.lane.b32.xlu0 %v4265_v16, %s4802_s20  ;;  %s3141_s20 = sshll.u32 (%p4089_p10), %s4070_s12, 5 }
 0x2a0   : > { %3342 = vmatprep.mubr.msk.f32.mxu0 %vm974_vm2, %v4265_v16  ;;  %s2769_s26 = scalar_lea.vmem (%p4089_p10), %s4795_s17, %s3141_s20 }
 0x311   : > { %v955_v18 = vpop.permute.xlu0 %954  ;;  %v4305_v28 = vpop.permute.xlu1 %972 }
 0x312   : > { %958 = vst.msk [vmem:[%s4277_s30] sm:$0xff] %vm758_vm0, %v955_v18 }
 0x319   : > { %v964_v20 = vld [vmem:[%s4235_s0] sm:$0xff]  ;;  %v965_v21 = vld [vmem:[%s4235_s0 + $0x8] sm:$0xff]  ;;  %v4290_v22 = vld [vmem:[%s4235_s0 + $0x10] sm:$0xff] }
 0x31a   : > { %v3612_v24 = vpack.c.bf16 %v965_v21, %v964_v20  ;;  %v4293_v25 = vld [vmem:[%s4235_s0 + $0x18] sm:$0xff]  ;;  %v3822_v53 = vpack.i.bf16 %v965_v21, %v964_v20 }
 0x31b   : > { %v3618_v27 = vpack.c.bf16 %v4293_v25, %v4290_v22  ;;  %v3827_v20 = vpack.i.bf16 %v4293_v25, %v4290_v22 }
 0x31c   : > { %3614 = vmatprep.subr.msk.bf16.mxu0 %vm4283_vm3, %v3612_v24 }
 0x31d   : > { %3617 = vmatpush3.bf16.xpose.msk.msra.mxu0 %vm4283_vm3, %v3612_v24 }
 0x31e   : > { %3620 = vmatprep.subr.msk.bf16.mxu0 %vm4283_vm3, %v3618_v27 }
 0x325   : > { %3623 = vmatpush3.bf16.xpose.msk.msra.mxu0 %vm4283_vm3, %v3618_v27 }
 0x32c   : > { %3343 = vmatmul.mubr.msk.f32.vlgmr.msra.gmra.mrb[2].mxu0 %vm974_vm2, %v4305_v28 }
 0x3ff   : > { %v3344_v29 = vpop.f32.mrb[2].mxu0 }
 0x400   : > { %v1067_v32 = vmul.f32 0.25, %v3344_v29  ;;  %v1057_v34 = vpop.f32.mrb[3].mxu0 }
 0x401   : > { %v1066_v37 = vmul.f32 0.25, %v1057_v34 }
 0x402   : > { %v1069_v38 = vadd.f32 %v1067_v32, %v4312_v30 }
 0x403   : > { %v1068_v40 = vadd.f32 %v1066_v37, %v4317_v35 }
 0x404   : > { %v1073_v41 = vsel %vm758_vm0, %v1069_v38, -inf }
 0x405   : > { %1074 = vmax.xlane.f32.xlu0 %v1073_v41  ;;  %v1070_v43 = vsel %vm758_vm0, %v1068_v40, -inf }
 0x406   : > { %1071 = vmax.xlane.f32.xlu1 %v1070_v43 }
 0x417   : > { %959 = vrot.lane.b32.xlu1 %v4265_v16, %s4804_s27 }
 0x41b   : > { %3823 = vrot.lane.b32.xlu0 %v3822_v53, %s4800_s14 }
 0x492   : > { %v1075_v57 = vpop.xlane.xlu0 %1074 }
 0x493   : > { %v1077_v58 = vsub.f32 %v1069_v38, %v1075_v57  ;;  %v1072_v60 = vpop.xlane.xlu1 %1071 }
 0x494   : > { %v1076_v61 = vsub.f32 %v1068_v40, %v1072_v60 }
 0x495   : > { %v1080_v62 = vmul.f32 1.442695, %v1077_v58 }
 0x496   : > { %v1078_v63 = vmul.f32 1.442695, %v1076_v61  ;;  %v3824_v1 = vpop.permute.xlu0 %3823 }
 0x497   : > { %3864 = vpow2.f32 %v1080_v62  ;;  %v960_v0 = vpop.permute.xlu1 %959  ;;  %v3826_v8 = vunpack.i.h.bf16 %v3824_v1  ;;  %v3825_v9 = vunpack.i.l.bf16 %v3824_v1 }
 0x498   : > { %963 = vst.msk [vmem:[%s4348_s29] sm:$0xff] %vm758_vm0, %v960_v0  ;;  %3866 = vpow2.f32 %v1078_v63 }
 0x499   : > { %v3632_v15 = vpack.c.bf16 %v3826_v8, %v3825_v9 }
 0x49f   : > { %v4353_v2 = vld [vmem:[%s4327_s22] sm:$0xff]  ;;  %v4356_v3 = vld [vmem:[%s4327_s22 + $0x8] sm:$0xff]  ;;  %v4359_v4 = vld [vmem:[%s4327_s22 + $0x10] sm:$0xff] }
 0x4a0   : > { %v3624_v5 = vpack.c.bf16 %v4356_v3, %v4353_v2  ;;  %v4364_v6 = vld [vmem:[%s4327_s22 + $0x18] sm:$0xff] }
 0x4a1   : > { %v3865_v7 = vpop.eup %3864  ;;  %v3628_v13 = vpack.c.bf16 %v4364_v6, %v4359_v4 }
 0x4a2   : > { %3625 = vmatprep.subr.bf16.mxu0 %v3624_v5  ;;  %v1085_v12 = vsel %vm758_vm0, %v3865_v7, 0.0  ;;  %v3867_v14 = vpop.eup %3866 }
 0x4a3   : > { %1086 = vadd.xlane.f32.xlu1 %v1085_v12  ;;  %3627 = vmatpush3.bf16.msra.mxu0 %v3624_v5  ;;  %v1082_v18 = vsel %vm758_vm0, %v3867_v14, 0.0  ;;  %v3837_v5 = vpack.i.bf16 %v4364_v6, %v4359_v4 }
 0x4a4   : > { %3629 = vmatprep.subr.bf16.mxu0 %v3628_v13 }
 0x4a7   : > { %1083 = vadd.xlane.f32.xlu1 %v1082_v18  ;;  %3631 = vmatpush3.bf16.msra.mxu0 %v3628_v13 }
 0x4a8   : > { %3634 = vmatprep.subr.msk.bf16.mxu0 %vm4283_vm3, %v3632_v15 }
 0x4b8   : > { %3828 = vrot.lane.b32.xlu1 %v3827_v20, %s4800_s14 }
 0x4bc   : > { %1173 = vrot.lane.b32.xlu1 %v4265_v16, %s4798_s28 }
 0x4c0   : > { %1175 = vrot.lane.b32.xlu1 %v4305_v28, %s4798_s28  ;;  %s4828_s28 = smov 112  }
 0x530   : > { %v1087_v21 = vpop.xlane.xlu1 %1086 }
 0x531   : > { %3868 = vrcp.f32 %v1087_v21 }
 0x534   : > { %v1084_v24 = vpop.xlane.xlu1 %1083 }
 0x535   : > { %3870 = vrcp.f32 %v1084_v24 }
 0x538   : > { %v3829_v27 = vpop.permute.xlu1 %3828 }
 0x539   : > { %v3831_v34 = vunpack.i.h.bf16 %v3829_v27  ;;  %v3830_v37 = vunpack.i.l.bf16 %v3829_v27  ;;  %v1411_v27 = vld [vmem:[%s4785_s7] sm:$0xff] }
 0x53b   : > { %v3869_v29 = vpop.eup %3868  ;;  %v3638_v25 = vpack.c.bf16 %v3831_v34, %v3830_v37  ;;  %v1414_v37 = vld [vmem:[%s4785_s7 + $0x18] sm:$0xff] }
 0x53c   : > { %v1091_v22 = vmul.f32 %v3869_v29, %v3865_v7  ;;  %v1174_v40 = vpop.permute.xlu1 %1173  ;;  %v3832_v7 = vpack.i.bf16 %v4356_v3, %v4353_v2  ;;  %v1412_v29 = vld [vmem:[%s4785_s7 + $0x8] sm:$0xff] }
 0x53d   : > { %v3653_v34 = vpack.c.bf16 %v1412_v29, %v1411_v27  ;;  %v1603_v27 = vld [vmem:[%s4787_s9 + $0x28] sm:$0xff] }
 0x53f   : > { %v3871_v32 = vpop.eup %3870 }
 0x540   : > { %v1090_v38 = vmul.f32 %v3871_v32, %v3867_v14  ;;  %v1176_v16 = vpop.permute.xlu1 %1175  ;;  %v1413_v32 = vld [vmem:[%s4785_s7 + $0x10] sm:$0xff] }
 0x542   : > { %3353 = vmatprep.mubr.msk.f32.mxu0 %vm758_vm0, %v1090_v38  ;;  %v3656_v38 = vpack.c.bf16 %v1414_v37, %v1413_v32  ;;  %v1604_v32 = vld [vmem:[%s4787_s9 + $0x30] sm:$0xff] }
 0x543   : > { %3354 = vmatmul.mubr.msk.f32.vlgmr.msra.gmra.mrb[4].mxu0 %vm758_vm0, %v1091_v22  ;;  %v1415_v22 = vld [vmem:[%s4785_s7 + $0x20] sm:$0xff] }
 0x544   : > { %3637 = vmatpush3.bf16.xpose.msk.msra.mxu0 %vm4283_vm3, %v3632_v15  ;;  %3364 = vmatprep.mubr.msk.f32.mxu0 %vm974_vm2, %v1174_v40 }
 0x545   : > { %3640 = vmatprep.subr.msk.bf16.mxu0 %vm4283_vm3, %v3638_v25 }
 0x54c   : > { %3643 = vmatpush3.bf16.xpose.msk.msra.mxu0 %vm4283_vm3, %v3638_v25  ;;  %v1416_v25 = vld [vmem:[%s4785_s7 + $0x28] sm:$0xff] }
 0x54d   : > { %3664 = vmatprep.subr.bf16.mxu0 %v3947_v23  ;;  %v3659_v40 = vpack.c.bf16 %v1416_v25, %v1415_v22 }
 0x553   : > { %3365 = vmatmul.mubr.msk.f32.vlgmr.msra.gmra.mrb[6].mxu0 %vm974_vm2, %v1176_v16  ;;  %v1417_v16 = vld [vmem:[%s4785_s7 + $0x30] sm:$0xff] }
 0x554   : > { %3405 = vmatprep.mubr.msk.f32.mxu0 %vm3948_vm1, %v3949_v26 }
 0x616   : > { %v3355_v28 = vpop.f32.mrb[4].mxu0 }
 0x617   : > { %v4392_v41 = vpop.f32.mrb[5].mxu0 }
 0x626   : > { %v3366_v43 = vpop.f32.mrb[6].mxu0 }
 0x627   : > { %v1273_v44 = vmul.f32 0.25, %v3366_v43  ;;  %v1263_v46 = vpop.f32.mrb[7].mxu0 }
 0x628   : > { %v1272_v47 = vmul.f32 0.25, %v1263_v46 }
 0x629   : > { %v1275_v49 = vadd.f32 %v1273_v44, %v4312_v30 }
 0x62a   : > { %v1274_v50 = vadd.f32 %v1272_v47, %v4317_v35 }
 0x62b   : > { %v1279_v52 = vsel %vm758_vm0, %v1275_v49, -inf }
 0x62c   : > { %1280 = vmax.xlane.f32.xlu0 %v1279_v52  ;;  %v1276_v53 = vsel %vm758_vm0, %v1274_v50, -inf }
 0x62d   : > { %1277 = vmax.xlane.f32.xlu1 %v1276_v53 }
 0x6b9   : > { %v1281_v55 = vpop.xlane.xlu0 %1280 }
 0x6ba   : > { %v1283_v56 = vsub.f32 %v1275_v49, %v1281_v55  ;;  %v1278_v57 = vpop.xlane.xlu1 %1277 }
 0x6bb   : > { %v1282_v58 = vsub.f32 %v1274_v50, %v1278_v57 }
 0x6bc   : > { %v1286_v60 = vmul.f32 1.442695, %v1283_v56 }
 0x6bd   : > { %v1284_v61 = vmul.f32 1.442695, %v1282_v58 }
 0x6be   : > { %3872 = vpow2.f32 %v1286_v60 }
 0x6bf   : > { %3874 = vpow2.f32 %v1284_v61 }
 0x6c8   : > { %v3873_v62 = vpop.eup %3872 }
 0x6c9   : > { %v3875_v63 = vpop.eup %3874  ;;  %v1291_v0 = vsel %vm758_vm0, %v3873_v62, 0.0 }
 0x6ca   : > { %1292 = vadd.xlane.f32.xlu1 %v1291_v0  ;;  %v1288_v1 = vsel %vm758_vm0, %v3875_v63, 0.0  ;;  %v1514_v0 = vld [vmem:[%s4786_s8 + $0x18] sm:$0xff] }
 0x6cb   : > { %1289 = vadd.xlane.f32.xlu0 %v1288_v1 }
 0x6db   : > { %3838 = vrot.lane.b32.xlu1 %v3837_v5, %s4800_s14 }
 0x6df   : > { %1396 = vrot.lane.b32.xlu1 %v3355_v28, %s4797_s2  ;;  %v1418_v28 = vld [vmem:[%s4785_s7 + $0x38] sm:$0xff]  ;;  %s4826_s2 = smov 32  }
 0x6e0   : > { %v3662_v43 = vpack.c.bf16 %v1418_v28, %v1417_v16 }
 0x6e1   : > { %3833 = vrot.lane.b32.xlu0 %v3832_v7, %s4800_s14  ;;  %s727_s14 = scalar_lea.vmem %s4794_s16, %s4112_s24 }
 0x757   : > { %v1293_v8 = vpop.xlane.xlu1 %1292 }
 0x758   : > { %v1290_v9 = vpop.xlane.xlu0 %1289 }
 0x759   : > { %3876 = vrcp.f32 %v1290_v9  ;;  %v1494_v9 = vld [vmem:[%s4789_s11] sm:$0x1] }
 0x75a   : > { %3878 = vrcp.f32 %v1293_v8 }
 0x75b   : > { %v3839_v12 = vpop.permute.xlu1 %3838 }
 0x75c   : > { %v3834_v13 = vpop.permute.xlu0 %3833  ;;  %v3841_v14 = vunpack.i.h.bf16 %v3839_v12  ;;  %v3840_v15 = vunpack.i.l.bf16 %v3839_v12  ;;  %v1503_v12 = vadd.f32 1.0, %v1494_v9 }
 0x75d   : > { %v3836_v18 = vunpack.i.h.bf16 %v3834_v13  ;;  %v3835_v4 = vunpack.i.l.bf16 %v3834_v13 }
 0x75e   : > { %v3648_v20 = vpack.c.bf16 %v3841_v14, %v3840_v15  ;;  %v1508_v13 = vrot.slane %v1503_v12, %v4225_v59 }
 0x75f   : > { %v3644_v6 = vpack.c.bf16 %v3836_v18, %v3835_v4  ;;  %v1397_v47 = vpop.permute.xlu1 %1396  ;;  %v1598_v4 = vld [vmem:[%s4787_s9] sm:$0xff] }
 0x760   : > { %v1407_v49 = vsel %vm974_vm2, %v4392_v41, %v1397_v47  ;;  %v1511_v41 = vld [vmem:[%s4786_s8] sm:$0xff] }
 0x761   : > { %3645 = vmatprep.subr.bf16.mxu1 %v3644_v6 }
 0x762   : > { %3647 = vmatpush3.bf16.msra.mxu1 %v3644_v6  ;;  %v1599_v6 = vld [vmem:[%s4787_s9 + $0x8] sm:$0xff] }
 0x763   : > { %v3877_v21 = vpop.eup %3876  ;;  %3649 = vmatprep.subr.bf16.mxu1 %v3648_v20 }
 0x764   : > { %v3879_v24 = vpop.eup %3878  ;;  %v1296_v2 = vmul.f32 %v3877_v21, %v3875_v63  ;;  %v3671_v21 = vpack.c.bf16 %v1599_v6, %v1598_v4 }
 0x765   : > { %v1297_v3 = vmul.f32 %v3879_v24, %v3873_v62  ;;  %v1512_v62 = vld [vmem:[%s4786_s8 + $0x8] sm:$0xff]  ;;  %v1601_v24 = vld [vmem:[%s4787_s9 + $0x18] sm:$0xff] }
 0x766   : > { %3651 = vmatpush3.bf16.msra.mxu1 %v3648_v20  ;;  %3375 = vmatprep.mubr.msk.f32.mxu1 %vm758_vm0, %v1296_v2  ;;  %v3665_v63 = vpack.c.bf16 %v1512_v62, %v1511_v41  ;;  %v1600_v20 = vld [vmem:[%s4787_s9 + $0x10] sm:$0xff] }
 0x767   : > { %3652 = vmatprep.subr.bf16.mxu1 %v3947_v23  ;;  %v3674_v2 = vpack.c.bf16 %v1601_v24, %v1600_v20 }
 0x768   : > { %3666 = vmatpush3.bf16.msra.mxu0 %v3665_v63 }
 0x769   : > { %3376 = vmatmul.mubr.msk.f32.vlgmr.msra.gmra.mrb[2].mxu1 %vm758_vm0, %v1297_v3  ;;  %3667 = vmatprep.subr.bf16.mxu0 %v3947_v23  ;;  %v1602_v3 = vld [vmem:[%s4787_s9 + $0x20] sm:$0xff] }
 0x76a   : > { %3394 = vmatprep.mubr.msk.f32.mxu1 %vm3948_vm1, %v3949_v26  ;;  %3654 = vmatpush3.bf16.msra.mxu1 %v3653_v34  ;;  %v3677_v29 = vpack.c.bf16 %v1603_v27, %v1602_v3  ;;  %v1605_v34 = vld [vmem:[%s4787_s9 + $0x38] sm:$0xff] }
 0x76b   : > { %3655 = vmatprep.subr.bf16.mxu1 %v3947_v23  ;;  %v3680_v37 = vpack.c.bf16 %v1605_v34, %v1604_v32 }
 0x76e   : > { %3657 = vmatpush3.bf16.msra.mxu1 %v3656_v38 }
 0x76f   : > { %3658 = vmatprep.subr.bf16.mxu1 %v3947_v23 }
 0x772   : > { %3660 = vmatpush3.bf16.msra.mxu1 %v3659_v40 }
 0x773   : > { %3661 = vmatprep.subr.bf16.mxu1 %v3947_v23 }
 0x776   : > { %3663 = vmatpush3.bf16.msra.mxu1 %v3662_v43 }
 0x777   : > { %3682 = vmatprep.subr.bf16.mxu1 %v3947_v23 }
 0x83c   : > { %v3377_v44 = vpop.f32.mrb[2].mxu1 }
 0x83d   : > { %1404 = vrot.lane.b32.xlu1 %v3377_v44, %s4806_s4  ;;  %v1386_v46 = vpop.f32.mrb[3].mxu1  ;;  %s4831_s4 = smov 48  }
 0x83e   : > { %1400 = vrot.lane.b32.xlu0 %v1386_v46, %s4826_s2 }
 0x8af   : > { %v1405_v52 = vpop.permute.xlu1 %1404 }
 0x8b0   : > { %v1401_v50 = vpop.permute.xlu0 %1400 }
 0x8b1   : > { %v1408_v53 = vsel %vm758_vm0, %v1407_v49, %v1401_v50 }
 0x8b2   : > { %v1410_v55 = vsel %vm1409_vm4, %v1408_v53, %v1405_v52 }
 0x8b3   : > { %3395 = vmatmul.mubr.msk.f32.vlgmr.msra.gmra.mrb[4].mxu1 %vm1419_vm5, %v1410_v55  ;;  %v3073_v55 = vld [vmem:[%s4784_s6 + $0x20] sm:$0xff] }
 0x8b4   : > { %3435 = vmatprep.mubr.msk.f32.mxu1 %vm3948_vm1, %v3949_v26 }
 0x986   : > { %v1489_v56 = vpop.f32.mrb[4].mxu1 }
 0x987   : > { %v1493_v57 = vadd.f32 %v1489_v56, %v4118_v17  ;;  %v3396_v58 = vpop.f32.mrb[5].mxu1  ;;  %v1513_v17 = vld [vmem:[%s4786_s8 + $0x10] sm:$0xff]  ;;  %v3074_v56 = vld [vmem:[%s4784_s6 + $0x28] sm:$0xff] }
 0x988   : > { %v3668_v1 = vpack.c.bf16 %v1514_v0, %v1513_v17  ;;  %v3683_v58 = vpack.c.bf16 %v3074_v56, %v3073_v55  ;;  %v3072_v17 = vld [vmem:[%s4788_s10 + $0x1] sm:$0x1] }
 0x989   : > { %v1495_v60 = vmul.f32 %v1493_v57, %v1493_v57  ;;  %v1690_v0 = vadd.f32 1.0, %v3072_v17 }
 0x98a   : > { %3669 = vmatpush3.bf16.msra.mxu0 %v3668_v1  ;;  %3684 = vmatpush3.bf16.msra.mxu1 %v3683_v58 }
 0x98b   : > { %v1496_v61 = vsel %vm758_vm0, %v1495_v60, 0.0  ;;  %3670 = vmatprep.subr.bf16.mxu0 %v3947_v23  ;;  %3685 = vmatprep.subr.bf16.mxu1 %v3947_v23  ;;  %v3076_v60 = vld [vmem:[%s4784_s6 + $0x38] sm:$0xff]  ;;  %v1695_v1 = vrot.slane %v1690_v0, %v4225_v59 }
 0x98c   : > { %1497 = vadd.xlane.f32.xlu0 %v1496_v61 }
 0xa19   : > { %v1498_v5 = vpop.xlane.xlu0 %1497 }
 0xa1a   : > { %v1499_v7 = vmul.f32 0.03125, %v1498_v5 }
 0xa1c   : > { %v1500_v8 = vadd.f32 1e-06, %v1499_v7 }
 0xa1e   : > { %3880 = vrsqrt.f32 %v1500_v8 }
 0xa28   : > { %v3881_v14 = vpop.eup %3880 }
 0xa29   : > { %v1502_v15 = vmul.f32 %v3881_v14, %v1493_v57 }
 0xa2b   : > { %v1510_v18 = vmul.f32 %v1508_v13, %v1502_v15 }
 0xa2d   : > { %3406 = vmatmul.mubr.msk.f32.vlgmr.msra.gmra.mrb[8].mxu0 %vm758_vm0, %v1510_v18 }
 0xa2e   : > { %3424 = vmatprep.mubr.msk.f32.mxu0 %vm3948_vm1, %v3949_v26  ;;  %3672 = vmatpush3.bf16.msra.mxu0 %v3671_v21 }
 0xa2f   : > { %3673 = vmatprep.subr.bf16.mxu0 %v3947_v23 }
 0xa32   : > { %3675 = vmatpush3.bf16.msra.mxu0 %v3674_v2 }
 0xa33   : > { %3676 = vmatprep.subr.bf16.mxu0 %v3947_v23 }
 0xa36   : > { %3678 = vmatpush3.bf16.msra.mxu0 %v3677_v29 }
 0xa37   : > { %3679 = vmatprep.subr.bf16.mxu0 %v3947_v23 }
 0xa3a   : > { %3681 = vmatpush3.bf16.msra.mxu0 %v3680_v37 }
 0xb00   : > { %v1584_v38 = vpop.f32.mrb[8].mxu0 }
 0xb01   : > { %1594 = vrot.lane.b32.xlu1 %v1584_v38, %s4827_s5  ;;  %v3407_v22 = vpop.f32.mrb[9].mxu0  ;;  %v1589_v25 = vmul.f32 0.70710677, %v1584_v38  ;;  %v1588_v28 = vmul.f32 0.5, %v1584_v38 }
 0xb03   : > { %3882 = verf.f32 %v1589_v25 }
 0xb0d   : > { %v3883_v40 = vpop.eup %3882 }
 0xb0e   : > { %v1591_v16 = vadd.f32 1.0, %v3883_v40 }
 0xb10   : > { %v1592_v43 = vmul.f32 %v1591_v16, %v1588_v28 }
 0xb73   : > { %v1595_v44 = vpop.permute.xlu1 %1594 }
 0xb74   : > { %v1597_v46 = vmul.f32 %v1595_v44, %v1592_v43 }
 0xb76   : > { %3425 = vmatmul.mubr.msk.f32.vlgmr.msra.gmra.mrb[10].mxu0 %vm1419_vm5, %v1597_v46 }
 0xc49   : > { %v1675_v47 = vpop.f32.mrb[10].mxu0 }
 0xc4a   : > { %v4501_v49 = vadd.f32 %v1675_v47, %v1493_v57  ;;  %v3426_v50 = vpop.f32.mrb[11].mxu0  ;;  %v3075_v57 = vld [vmem:[%s4784_s6 + $0x30] sm:$0xff] }
 0xc4b   : > { %v3686_v61 = vpack.c.bf16 %v3076_v60, %v3075_v57 }
 0xc4c   : > { %v1682_v52 = vmul.f32 %v4501_v49, %v4501_v49 }
 0xc4d   : > { %3687 = vmatpush3.bf16.msra.mxu1 %v3686_v61 }
 0xc4e   : > { %v1683_v53 = vsel %vm758_vm0, %v1682_v52, 0.0  ;;  %3688 = vmatprep.subr.bf16.mxu1 %v3947_v23 }
 0xc4f   : > { %1684 = vadd.xlane.f32.xlu1 %v1683_v53 }
 0xcdc   : > { %v1685_v41 = vpop.xlane.xlu1 %1684 }
 0xcdd   : > { %v1686_v62 = vmul.f32 0.03125, %v1685_v41 }
 0xcdf   : > { %v1687_v63 = vadd.f32 1e-06, %v1686_v62 }
 0xce1   : > { %3884 = vrsqrt.f32 %v1687_v63 }
 0xceb   : > { %v3885_v5 = vpop.eup %3884 }
 0xcec   : > { %v1689_v7 = vmul.f32 %v3885_v5, %v4501_v49 }
 0xcee   : > { %v1697_v8 = vmul.f32 %v1695_v1, %v1689_v7 }
 0xcf0   : > { %3436 = vmatmul.mubr.msk.f32.vlgmr.msra.gmra.mrb[6].mxu1 %vm758_vm0, %v1697_v8 }
 0xcf1   : > { %3690 = vmatpush3.bf16.msra.mxu1 %v4151_v31  ;;  %3470 = vmatprep.mubr.msk.f32.mxu1 %vm3948_vm1, %v3949_v26 }
 0xcf2   : > { %3691 = vmatprep.subr.bf16.mxu1 %v3947_v23 }
 0xcf5   : > { %3693 = vmatpush3.bf16.msra.mxu1 %v4157_v33 }
 0xcf6   : > { %3694 = vmatprep.subr.bf16.mxu1 %v3947_v23 }
 0xcf9   : > { %3696 = vmatpush3.bf16.msra.mxu1 %v4167_v36 }
 0xcfa   : > { %3697 = vmatprep.subr.bf16.mxu1 %v3947_v23 }
 0xcfd   : > { %3699 = vmatpush3.bf16.msra.mxu1 %v4177_v39 }
 0xcfe   : > { %3700 = vmatprep.subr.bf16.mxu1 %v3947_v23 }
 0xd01   : > { %3702 = vmatpush3.bf16.msra.mxu1 %v4187_v42 }
 0xd02   : > { %3703 = vmatprep.subr.bf16.mxu1 %v3947_v23 }
 0xd05   : > { %3705 = vmatpush3.bf16.msra.mxu1 %v4197_v45 }
 0xd06   : > { %3706 = vmatprep.subr.bf16.mxu1 %v3947_v23 }
 0xd09   : > { %3708 = vmatpush3.bf16.msra.mxu1 %v4207_v48 }
 0xd0a   : > { %3709 = vmatprep.subr.bf16.mxu1 %v3947_v23 }
 0xd0d   : > { %3711 = vmatpush3.bf16.msra.mxu1 %v4217_v51 }
 0xdc3   : > { %v1772_v31 = vpop.f32.mrb[6].mxu1 }
 0xdc4   : > { %v3437_v33 = vpop.f32.mrb[7].mxu1  ;;  %3471 = vmatmul.mubr.f32.vlgmr.msra.gmra.mrb[8].mxu1 %v1772_v31  ;;  %v1776_v39 = vmul.f32 %v1772_v31, %v4256_v10 }
 0xe97   : > { %v1843_v36 = vpop.f32.mrb[8].mxu1 }
 0xe98   : > { %v1847_v42 = vmul.f32 %v1843_v36, %v4261_v11  ;;  %v3472_v45 = vpop.f32.mrb[9].mxu1 }
 0xe9a   : > { %v1848_v9 = vadd.f32 %v1847_v42, %v1776_v39 }
 0xe9c   : > { %1871 = vrot.lane.b32.xlu1 %v1848_v9, %s4828_s28  ;;  %1850 = vrot.lane.b32.xlu0 %v1848_v9, %s4827_s5 }
 0xe9d   : > { %3481 = vmatprep.mubr.msk.f32.mxu0 %vm974_vm2, %v1848_v9 }
 0xf0e   : > { %v1851_v48 = vpop.permute.xlu0 %1850  ;;  %v1872_v4 = vpop.permute.xlu1 %1871 }
 0xf0f   : > { %3078 = vst.msk [vmem:[%s4277_s30 + $0x20] sm:$0xff] %vm758_vm0, %v1851_v48  ;;  %s4829_s30 = smov 96  }
 0xf16   : > { %v3080_v51 = vld [vmem:[%s4235_s0 + $0x20] sm:$0xff]  ;;  %v3081_v12 = vld [vmem:[%s4235_s0 + $0x28] sm:$0xff]  ;;  %v3082_v13 = vld [vmem:[%s4235_s0 + $0x30] sm:$0xff] }
 0xf17   : > { %v3712_v14 = vpack.c.bf16 %v3081_v12, %v3080_v51  ;;  %v3083_v15 = vld [vmem:[%s4235_s0 + $0x38] sm:$0xff]  ;;  %v3842_v18 = vpack.i.bf16 %v3081_v12, %v3080_v51 }
 0xf18   : > { %v3847_v10 = vpack.i.bf16 %v3083_v15, %v3082_v13  ;;  %v3718_v11 = vpack.c.bf16 %v3083_v15, %v3082_v13 }
 0xf19   : > { %3714 = vmatprep.subr.msk.bf16.mxu0 %vm4283_vm3, %v3712_v14 }
 0xf1a   : > { %3717 = vmatpush3.bf16.xpose.msk.msra.mxu0 %vm4283_vm3, %v3712_v14 }
 0xf1b   : > { %3720 = vmatprep.subr.msk.bf16.mxu0 %vm4283_vm3, %v3718_v11 }
 0xf22   : > { %3723 = vmatpush3.bf16.xpose.msk.msra.mxu0 %vm4283_vm3, %v3718_v11 }
 0xf29   : > { %3482 = vmatmul.mubr.msk.f32.vlgmr.msra.gmra.mrb[12].mxu0 %vm974_vm2, %v1872_v4 }
 0xffc   : > { %v3483_v6 = vpop.f32.mrb[12].mxu0 }
 0xffd   : > { %v1965_v20 = vmul.f32 0.25, %v3483_v6  ;;  %v1955_v21 = vpop.f32.mrb[13].mxu0 }
 0xffe   : > { %v1964_v24 = vmul.f32 0.25, %v1955_v21 }
 0xfff   : > { %v1967_v2 = vadd.f32 %v1965_v20, %v4312_v30 }
0x1000   : > { %v1966_v3 = vadd.f32 %v1964_v24, %v4317_v35 }
0x1001   : > { %v1971_v27 = vsel %vm758_vm0, %v1967_v2, -inf }
0x1002   : > { %1972 = vmax.xlane.f32.xlu1 %v1971_v27  ;;  %v1968_v29 = vsel %vm758_vm0, %v1966_v3, -inf }
0x1003   : > { %1969 = vmax.xlane.f32.xlu0 %v1968_v29 }
0x1013   : > { %3843 = vrot.lane.b32.xlu1 %v3842_v18, %s4828_s28 }
0x1017   : > { %3848 = vrot.lane.b32.xlu1 %v3847_v10, %s4828_s28 }
0x101b   : > { %2073 = vrot.lane.b32.xlu1 %v1872_v4, %s4829_s30 }
0x108f   : > { %v1973_v32 = vpop.xlane.xlu1 %1972 }
0x1090   : > { %v1975_v34 = vsub.f32 %v1967_v2, %v1973_v32  ;;  %v1970_v37 = vpop.xlane.xlu0 %1969 }
0x1091   : > { %v1974_v38 = vsub.f32 %v1966_v3, %v1970_v37 }
0x1092   : > { %v1978_v22 = vmul.f32 1.442695, %v1975_v34 }
0x1093   : > { %v1976_v25 = vmul.f32 1.442695, %v1974_v38  ;;  %v3844_v52 = vpop.permute.xlu1 %3843 }
0x1094   : > { %3886 = vpow2.f32 %v1978_v22  ;;  %v3846_v62 = vunpack.i.h.bf16 %v3844_v52  ;;  %v3845_v63 = vunpack.i.l.bf16 %v3844_v52  ;;  %v3107_v52 = vld [vmem:[%s4785_s7 + $0x58] sm:$0xff] }
0x1095   : > { %3888 = vpow2.f32 %v1976_v25 }
0x1096   : > { %v3732_v1 = vpack.c.bf16 %v3846_v62, %v3845_v63 }
0x1097   : > { %v3849_v5 = vpop.permute.xlu1 %3848 }
0x1098   : > { %v3851_v31 = vunpack.i.h.bf16 %v3849_v5  ;;  %v3850_v33 = vunpack.i.l.bf16 %v3849_v5 }
0x109a   : > { %v3738_v36 = vpack.c.bf16 %v3851_v31, %v3850_v33 }
0x109b   : > { %v2074_v39 = vpop.permute.xlu1 %2073 }
0x109e   : > { %v3887_v40 = vpop.eup %3886 }
0x109f   : > { %v1983_v16 = vsel %vm758_vm0, %v3887_v40, 0.0  ;;  %v3889_v28 = vpop.eup %3888 }
0x10a0   : > { %1984 = vadd.xlane.f32.xlu0 %v1983_v16  ;;  %v1980_v43 = vsel %vm758_vm0, %v3889_v28, 0.0 }
0x10a4   : > { %1981 = vadd.xlane.f32.xlu0 %v1980_v43 }
0x10ba   : > { %1856 = vrot.lane.b32.xlu0 %v1848_v9, %s4826_s2 }
0x10be   : > { %2071 = vrot.lane.b32.xlu0 %v1848_v9, %s4829_s30 }
0x112d   : > { %v1985_v44 = vpop.xlane.xlu0 %1984 }
0x1131   : > { %v1982_v46 = vpop.xlane.xlu0 %1981 }
0x1132   : > { %3890 = vrcp.f32 %v1982_v46  ;;  %v3105_v46 = vld [vmem:[%s4785_s7 + $0x48] sm:$0xff] }
0x1133   : > { %3892 = vrcp.f32 %v1985_v44  ;;  %v3104_v44 = vld [vmem:[%s4785_s7 + $0x40] sm:$0xff] }
0x1135   : > { %v1857_v47 = vpop.permute.xlu0 %1856 }
0x1136   : > { %3079 = vst.msk [vmem:[%s4348_s29 + $0x20] sm:$0xff] %vm758_vm0, %v1857_v47  ;;  %s4830_s29 = smov 16   ;;  %v3106_v47 = vld [vmem:[%s4785_s7 + $0x50] sm:$0xff] }
0x1139   : > { %v2072_v8 = vpop.permute.xlu0 %2071 }
0x113c   : > { %v3891_v50 = vpop.eup %3890 }
0x113d   : > { %v1988_v53 = vmul.f32 %v3891_v50, %v3889_v28  ;;  %v3084_v55 = vld [vmem:[%s4327_s22 + $0x20] sm:$0xff]  ;;  %v3085_v56 = vld [vmem:[%s4327_s22 + $0x28] sm:$0xff]  ;;  %v4579_v58 = vld [vmem:[%s4327_s22 + $0x30] sm:$0xff]  ;;  %v3893_v0 = vpop.eup %3892  ;;  %v3753_v50 = vpack.c.bf16 %v3105_v46, %v3104_v44  ;;  %v2581_v44 = vand.u32 127, %v797_v54  ;;  %v2582_v46 = vstv %s3051_s3 }
0x113e   : > { %v3724_v57 = vpack.c.bf16 %v3085_v56, %v3084_v55  ;;  %v4582_v60 = vld [vmem:[%s4327_s22 + $0x38] sm:$0xff]  ;;  %v3852_v61 = vpack.i.bf16 %v3085_v56, %v3084_v55  ;;  %v1989_v7 = vmul.f32 %v3893_v0, %v3887_v40  ;;  %v3108_v55 = vld [vmem:[%s4785_s7 + $0x60] sm:$0xff]  ;;  %v3109_v56 = vld [vmem:[%s4785_s7 + $0x68] sm:$0xff] }
0x113f   : > { %3492 = vmatprep.mubr.msk.f32.mxu0 %vm758_vm0, %v1988_v53  ;;  %v3857_v41 = vpack.i.bf16 %v4582_v60, %v4579_v58  ;;  %v3728_v17 = vpack.c.bf16 %v4582_v60, %v4579_v58  ;;  %v3756_v53 = vpack.c.bf16 %v3107_v52, %v3106_v47  ;;  %v3759_v58 = vpack.c.bf16 %v3109_v56, %v3108_v55  ;;  %v3111_v60 = vld [vmem:[%s4785_s7 + $0x78] sm:$0xff] }
0x1140   : > { %3725 = vmatprep.subr.bf16.mxu0 %v3724_v57  ;;  %vm2583_vm6 = vcmp.eq.s32.totalorder %v2581_v44, %v2582_v46 }
0x1141   : > { %3727 = vmatpush3.bf16.msra.mxu0 %v3724_v57  ;;  %v3110_v57 = vld [vmem:[%s4785_s7 + $0x70] sm:$0xff] }
0x1142   : > { %3729 = vmatprep.subr.bf16.mxu0 %v3728_v17 }
0x1145   : > { %3731 = vmatpush3.bf16.msra.mxu0 %v3728_v17 }
0x1146   : > { %3734 = vmatprep.subr.msk.bf16.mxu0 %vm4283_vm3, %v3732_v1 }
0x1148   : > { %3493 = vmatmul.mubr.msk.f32.vlgmr.msra.gmra.mrb[14].mxu0 %vm758_vm0, %v1989_v7 }
0x1149   : > { %3503 = vmatprep.mubr.msk.f32.mxu0 %vm974_vm2, %v2072_v8 }
0x114e   : > { %3737 = vmatpush3.bf16.xpose.msk.msra.mxu0 %vm4283_vm3, %v3732_v1 }
0x114f   : > { %3740 = vmatprep.subr.msk.bf16.mxu0 %vm4283_vm3, %v3738_v36 }
0x1156   : > { %3743 = vmatpush3.bf16.xpose.msk.msra.mxu0 %vm4283_vm3, %v3738_v36 }
0x1157   : > { %3764 = vmatprep.subr.bf16.mxu0 %v3947_v23 }
0x115d   : > { %3504 = vmatmul.mubr.msk.f32.vlgmr.msra.gmra.mrb[16].mxu0 %vm974_vm2, %v2074_v39 }
0x115e   : > { %3544 = vmatprep.mubr.msk.f32.mxu0 %vm3948_vm1, %v3949_v26 }
0x121b   : > { %v3494_v42 = vpop.f32.mrb[14].mxu0 }
0x121c   : > { %v4603_v45 = vpop.f32.mrb[15].mxu0 }
0x1230   : > { %v3505_v9 = vpop.f32.mrb[16].mxu0 }
0x1231   : > { %v2171_v48 = vmul.f32 0.25, %v3505_v9  ;;  %v2161_v51 = vpop.f32.mrb[17].mxu0 }
0x1232   : > { %v2170_v12 = vmul.f32 0.25, %v2161_v51 }
0x1233   : > { %v2173_v13 = vadd.f32 %v2171_v48, %v4312_v30  ;;  %v3117_v48 = vld [vmem:[%s4786_s8 + $0x38] sm:$0xff] }
0x1234   : > { %v2172_v19 = vadd.f32 %v2170_v12, %v4317_v35 }
0x1235   : > { %v2177_v14 = vsel %vm758_vm0, %v2173_v13, -inf }
0x1236   : > { %2178 = vmax.xlane.f32.xlu1 %v2177_v14  ;;  %v2174_v15 = vsel %vm758_vm0, %v2172_v19, -inf  ;;  %v3113_v14 = vld [vmem:[%s4789_s11 + $0x1] sm:$0x1] }
0x1237   : > { %2175 = vmax.xlane.f32.xlu0 %v2174_v15  ;;  %v2401_v15 = vadd.f32 1.0, %v3113_v14 }
0x1247   : > { %3853 = vrot.lane.b32.xlu1 %v3852_v61, %s4828_s28  ;;  %v3762_v61 = vpack.c.bf16 %v3111_v60, %v3110_v57  ;;  %v2672_v57 = vld [vmem:[%s4791_s13] sm:$0xff]  ;;  %v2673_v60 = vld [vmem:[%s4791_s13 + $0x8] sm:$0xff] }
0x124b   : > { %2294 = vrot.lane.b32.xlu1 %v3494_v42, %s4830_s29  ;;  %v3114_v42 = vld [vmem:[%s4786_s8 + $0x20] sm:$0xff]  ;;  %s4832_s29 = sld [smem:[#allocation15_spill]] }
0x12c3   : > { %v2179_v18 = vpop.xlane.xlu1 %2178 }
0x12c4   : > { %v2181_v10 = vsub.f32 %v2173_v13, %v2179_v18  ;;  %v2176_v11 = vpop.xlane.xlu0 %2175  ;;  %v2406_v18 = vrot.slane %v2401_v15, %v4225_v59  ;;  %v3121_v59 = vld [vmem:[%s4787_s9 + $0x50] sm:$0xff] }
0x12c5   : > { %v2180_v4 = vsub.f32 %v2172_v19, %v2176_v11 }
0x12c6   : > { %v2184_v6 = vmul.f32 1.442695, %v2181_v10 }
0x12c7   : > { %v2182_v20 = vmul.f32 1.442695, %v2180_v4  ;;  %v3854_v21 = vpop.permute.xlu1 %3853 }
0x12c8   : > { %3894 = vpow2.f32 %v2184_v6  ;;  %v3856_v30 = vunpack.i.h.bf16 %v3854_v21  ;;  %v3855_v35 = vunpack.i.l.bf16 %v3854_v21  ;;  %v3119_v6 = vld [vmem:[%s4787_s9 + $0x40] sm:$0xff] }
0x12c9   : > { %3896 = vpow2.f32 %v2182_v20  ;;  %v3120_v20 = vld [vmem:[%s4787_s9 + $0x48] sm:$0xff] }
0x12ca   : > { %v3744_v24 = vpack.c.bf16 %v3856_v30, %v3855_v35  ;;  %v3771_v21 = vpack.c.bf16 %v3120_v20, %v3119_v6  ;;  %v3122_v30 = vld [vmem:[%s4787_s9 + $0x58] sm:$0xff] }
0x12cb   : > { %v2295_v63 = vpop.permute.xlu1 %2294  ;;  %v3774_v35 = vpack.c.bf16 %v3122_v30, %v3121_v59 }
0x12cc   : > { %3745 = vmatprep.subr.bf16.mxu1 %v3744_v24  ;;  %v2305_v17 = vsel %vm974_vm2, %v4603_v45, %v2295_v63  ;;  %v3115_v45 = vld [vmem:[%s4786_s8 + $0x28] sm:$0xff] }
0x12cd   : > { %3747 = vmatpush3.bf16.msra.mxu1 %v3744_v24  ;;  %v3765_v9 = vpack.c.bf16 %v3115_v45, %v3114_v42  ;;  %v3123_v24 = vld [vmem:[%s4787_s9 + $0x60] sm:$0xff]  ;;  %v2815_v42 = vld [vmem:[%s4235_s0 + $0x10] sm:$0xff] (%p4089_p10)  ;;  %v2817_v45 = vld [vmem:[%s4235_s0 + $0x18] sm:$0xff] (%p4089_p10) }
0x12ce   : > { %2816 = vst [vmem:[%s2769_s26 + $0x10] sm:$0xff] (%p4089_p10), %v2815_v42  ;;  %2818 = vst [vmem:[%s2769_s26 + $0x18] sm:$0xff] (%p4089_p10), %v2817_v45 }
0x12cf   : > { %3766 = vmatpush3.bf16.msra.mxu0 %v3765_v9  ;;  %v2819_v9 = vld [vmem:[%s4235_s0 + $0x20] sm:$0xff] (%p4089_p10) }
0x12d0   : > { %3767 = vmatprep.subr.bf16.mxu0 %v3947_v23  ;;  %2820 = vst [vmem:[%s2769_s26 + $0x40] sm:$0xff] (%p4089_p10), %v2819_v9 }
0x12d2   : > { %v3895_v2 = vpop.eup %3894 }
0x12d3   : > { %v2189_v3 = vsel %vm758_vm0, %v3895_v2, 0.0  ;;  %v3897_v27 = vpop.eup %3896 }
0x12d4   : > { %2190 = vadd.xlane.f32.xlu0 %v2189_v3  ;;  %v2186_v29 = vsel %vm758_vm0, %v3897_v27, 0.0 }
0x12d8   : > { %2187 = vadd.xlane.f32.xlu0 %v2186_v29  ;;  %v3126_v29 = vld [vmem:[%s4787_s9 + $0x78] sm:$0xff] }
0x12ee   : > { %3858 = vrot.lane.b32.xlu0 %v3857_v41, %s4828_s28 }
0x1361   : > { %v2191_v32 = vpop.xlane.xlu0 %2190 }
0x1362   : > { %3898 = vrcp.f32 %v2191_v32 }
0x1365   : > { %v2188_v34 = vpop.xlane.xlu0 %2187 }
0x1366   : > { %3900 = vrcp.f32 %v2188_v34 }
0x1369   : > { %v3859_v37 = vpop.permute.xlu0 %3858 }
0x136a   : > { %v3861_v38 = vunpack.i.h.bf16 %v3859_v37  ;;  %v3860_v22 = vunpack.i.l.bf16 %v3859_v37 }
0x136c   : > { %v3748_v25 = vpack.c.bf16 %v3861_v38, %v3860_v22  ;;  %v3899_v40 = vpop.eup %3898 }
0x136d   : > { %v2195_v43 = vmul.f32 %v3899_v40, %v3895_v2  ;;  %v3124_v2 = vld [vmem:[%s4787_s9 + $0x68] sm:$0xff] }
0x136e   : > { %3749 = vmatprep.subr.bf16.mxu1 %v3748_v25  ;;  %v3777_v3 = vpack.c.bf16 %v3124_v2, %v3123_v24 }
0x136f   : > { %3751 = vmatpush3.bf16.msra.mxu1 %v3748_v25 }
0x1370   : > { %v3901_v16 = vpop.eup %3900  ;;  %3752 = vmatprep.subr.bf16.mxu1 %v3947_v23 }
0x1371   : > { %v2194_v28 = vmul.f32 %v3901_v16, %v3897_v27  ;;  %v3125_v27 = vld [vmem:[%s4787_s9 + $0x70] sm:$0xff] }
0x1372   : > { %v3780_v32 = vpack.c.bf16 %v3126_v29, %v3125_v27 }
0x1373   : > { %3514 = vmatprep.mubr.msk.f32.mxu1 %vm758_vm0, %v2194_v28 }
0x1374   : > { %3515 = vmatmul.mubr.msk.f32.vlgmr.msra.gmra.mrb[10].mxu1 %vm758_vm0, %v2195_v43 }
0x1375   : > { %3533 = vmatprep.mubr.msk.f32.mxu1 %vm3948_vm1, %v3949_v26  ;;  %3754 = vmatpush3.bf16.msra.mxu1 %v3753_v50 }
0x1376   : > { %3755 = vmatprep.subr.bf16.mxu1 %v3947_v23 }
0x1379   : > { %3757 = vmatpush3.bf16.msra.mxu1 %v3756_v53  ;;  %v3128_v53 = vsel %vm2583_vm6, 1.0, %v3949_v26 }
0x137a   : > { %3758 = vmatprep.subr.bf16.mxu1 %v3947_v23 }
0x137d   : > { %3760 = vmatpush3.bf16.msra.mxu1 %v3759_v58 }
0x137e   : > { %3761 = vmatprep.subr.bf16.mxu1 %v3947_v23 }
0x1381   : > { %3763 = vmatpush3.bf16.msra.mxu1 %v3762_v61  ;;  %v3783_v61 = vpack.c.bf16 %v2673_v60, %v2672_v57 }
0x1382   : > { %3566 = vmatprep.subr.mxu1 %v3949_v26 }
0x1447   : > { %v3516_v41 = vpop.f32.mrb[10].mxu1 }
0x1448   : > { %2302 = vrot.lane.b32.xlu0 %v3516_v41, %s4831_s4  ;;  %v2284_v62 = vpop.f32.mrb[11].mxu1  ;;  %v2675_v41 = vld [vmem:[%s4791_s13 + $0x18] sm:$0xff] }
0x1449   : > { %2298 = vrot.lane.b32.xlu1 %v2284_v62, %s4826_s2 }
0x14ba   : > { %v2303_v1 = vpop.permute.xlu0 %2302 }
0x14bb   : > { %v2299_v0 = vpop.permute.xlu1 %2298 }
0x14bc   : > { %v2306_v5 = vsel %vm758_vm0, %v2305_v17, %v2299_v0 }
0x14bd   : > { %v2307_v7 = vsel %vm1409_vm4, %v2306_v5, %v2303_v1  ;;  %v2660_v1 = vld [vmem:[%s4832_s29] sm:$0x1] }
0x14be   : > { %3534 = vmatmul.mubr.msk.f32.vlgmr.msra.gmra.mrb[12].mxu1 %vm1419_vm5, %v2307_v7  ;;  %v2670_v5 = vadd.f32 1.0, %v2660_v1 }
0x14bf   : > { %3568 = vmatprep.mubr.msk.f32.mxu1 %vm3948_vm1, %v3949_v26 }
0x1591   : > { %v2386_v8 = vpop.f32.mrb[12].mxu1 }
0x1592   : > { %v4657_v31 = vadd.f32 %v2386_v8, %v4501_v49  ;;  %v3535_v33 = vpop.f32.mrb[13].mxu1  ;;  %v3116_v49 = vld [vmem:[%s4786_s8 + $0x30] sm:$0xff] }
0x1593   : > { %v3768_v51 = vpack.c.bf16 %v3117_v48, %v3116_v49  ;;  %v2821_v49 = vld [vmem:[%s4235_s0 + $0x28] sm:$0xff] (%p4089_p10)  ;;  %v2823_v48 = vld [vmem:[%s4235_s0 + $0x30] sm:$0xff] (%p4089_p10) }
0x1594   : > { %v2393_v36 = vmul.f32 %v4657_v31, %v4657_v31  ;;  %2822 = vst [vmem:[%s2769_s26 + $0x48] sm:$0xff] (%p4089_p10), %v2821_v49  ;;  %2824 = vst [vmem:[%s2769_s26 + $0x50] sm:$0xff] (%p4089_p10), %v2823_v48 }
0x1595   : > { %3769 = vmatpush3.bf16.msra.mxu0 %v3768_v51  ;;  %v2825_v51 = vld [vmem:[%s4235_s0 + $0x38] sm:$0xff] (%p4089_p10) }
0x1596   : > { %v2394_v39 = vsel %vm758_vm0, %v2393_v36, 0.0  ;;  %3770 = vmatprep.subr.bf16.mxu0 %v3947_v23  ;;  %v2811_v36 = vld [vmem:[%s4235_s0] sm:$0xff] (%p4089_p10)  ;;  %2826 = vst [vmem:[%s2769_s26 + $0x58] sm:$0xff] (%p4089_p10), %v2825_v51 }
0x1597   : > { %2395 = vadd.xlane.f32.xlu1 %v2394_v39  ;;  %v2813_v39 = vld [vmem:[%s4235_s0 + $0x8] sm:$0xff] (%p4089_p10)  ;;  %2812 = vst [vmem:[%s2769_s26] sm:$0xff] (%p4089_p10), %v2811_v36 }
0x1598   : > { %2814 = vst [vmem:[%s2769_s26 + $0x8] sm:$0xff] (%p4089_p10), %v2813_v39 }
0x1624   : > { %v2396_v12 = vpop.xlane.xlu1 %2395 }
0x1625   : > { %v2397_v13 = vmul.f32 0.03125, %v2396_v12 }
0x1627   : > { %v2398_v19 = vadd.f32 1e-06, %v2397_v13 }
0x1629   : > { %3902 = vrsqrt.f32 %v2398_v19 }
0x1633   : > { %v3903_v10 = vpop.eup %3902 }
0x1634   : > { %v2400_v11 = vmul.f32 %v3903_v10, %v4657_v31 }
0x1636   : > { %v2408_v4 = vmul.f32 %v2406_v18, %v2400_v11 }
0x1638   : > { %3545 = vmatmul.mubr.msk.f32.vlgmr.msra.gmra.mrb[18].mxu0 %vm758_vm0, %v2408_v4 }
0x1639   : > { %3563 = vmatprep.mubr.msk.f32.mxu0 %vm3948_vm1, %v3949_v26  ;;  %3772 = vmatpush3.bf16.msra.mxu0 %v3771_v21 }
0x163a   : > { %3773 = vmatprep.subr.bf16.mxu0 %v3947_v23 }
0x163d   : > { %3775 = vmatpush3.bf16.msra.mxu0 %v3774_v35 }
0x163e   : > { %3776 = vmatprep.subr.bf16.mxu0 %v3947_v23 }
0x1641   : > { %3778 = vmatpush3.bf16.msra.mxu0 %v3777_v3 }
0x1642   : > { %3779 = vmatprep.subr.bf16.mxu0 %v3947_v23 }
0x1645   : > { %3781 = vmatpush3.bf16.msra.mxu0 %v3780_v32 }
0x170b   : > { %v2483_v34 = vpop.f32.mrb[18].mxu0 }
0x170c   : > { %2493 = vrot.lane.b32.xlu0 %v2483_v34, %s4827_s5  ;;  %v3546_v37 = vpop.f32.mrb[19].mxu0  ;;  %v2488_v38 = vmul.f32 0.70710677, %v2483_v34  ;;  %v2487_v40 = vmul.f32 0.5, %v2483_v34 }
0x170e   : > { %3904 = verf.f32 %v2488_v38 }
0x1718   : > { %v3905_v22 = vpop.eup %3904 }
0x1719   : > { %v2490_v25 = vadd.f32 1.0, %v3905_v22 }
0x171b   : > { %v2491_v16 = vmul.f32 %v2490_v25, %v2487_v40 }
0x177e   : > { %v2494_v28 = vpop.permute.xlu0 %2493 }
0x177f   : > { %v2496_v43 = vmul.f32 %v2494_v28, %v2491_v16 }
0x1781   : > { %3564 = vmatmul.mubr.msk.f32.vlgmr.msra.gmra.mrb[20].mxu0 %vm1419_vm5, %v2496_v43 }
0x1854   : > { %v2575_v47 = vpop.f32.mrb[20].mxu0 }
0x1855   : > { %v2579_v50 = vadd.f32 %v2575_v47, %v4657_v31  ;;  %v3565_v52 = vpop.f32.mrb[21].mxu0 }
0x1857   : > { %3567 = vmatpush3.msra.mxu1 %v2579_v50 }
0x1858   : > { %3569 = vmatmul.mubr.msk.f32.vlgmr.msra.gmra.mrb[14].mxu1 %vm2586_vm7, %v3128_v53  ;;  %3782 = vmatprep.subr.bf16.mxu1 %v3947_v23 }
0x1859   : > { %3579 = vmatprep.mubr.msk.f32.mxu1 %vm3948_vm1, %v3949_v26  ;;  %3784 = vmatpush3.bf16.msra.mxu1 %v3783_v61  ;;  %v2674_v26 = vld [vmem:[%s4791_s13 + $0x10] sm:$0xff] }
0x185a   : > { %3785 = vmatprep.subr.bf16.mxu1 %v3947_v23  ;;  %v3786_v62 = vpack.c.bf16 %v2675_v41, %v2674_v26 }
0x185d   : > { %3787 = vmatpush3.bf16.msra.mxu1 %v3786_v62 }
0x192b   : > { %v2656_v55 = vpop.f32.mrb[14].mxu1 }
0x192c   : > { %v2661_v56 = vmul.f32 %v2656_v55, %v2656_v55  ;;  %v3570_v54 = vpop.f32.mrb[15].mxu1 }
0x192e   : > { %v2663_v58 = vsel %vm2662_vm8, %v2661_v56, 0.0 }
0x192f   : > { %2664 = vadd.xlane.f32.xlu0 %v2663_v58 }
0x19bc   : > { %v2665_v63 = vpop.xlane.xlu0 %2664 }
0x19bd   : > { %v2666_v17 = vmul.f32 0.03125, %v2665_v63 }
0x19bf   : > { %v2667_v0 = vadd.f32 1e-06, %v2666_v17 }
0x19c1   : > { %3906 = vrsqrt.f32 %v2667_v0 }
0x19cb   : > { %v3907_v23 = vpop.eup %3906 }
0x19cc   : > { %v2669_v7 = vmul.f32 %v3907_v23, %v2656_v55 }
0x19ce   : > { %v2671_v8 = vmul.f32 %v2670_v5, %v2669_v7 }
0x19d0   : > { %3580 = vmatmul.mubr.msk.f32.vlgmr.msra.gmra.mrb[16].mxu1 %vm758_vm0, %v2671_v8 }
0x1a9e   : > { %2766 = sbr.rel (!%p4089_p10) target bundleno = 6821 (0x1aa5), region = 164 }
0x1aa3   : > { %v2745_v31 = vpop.f32.mrb[16].mxu1 }
0x1aa4   : > { %2749 = vst [vmem:[%s727_s14] sm:$0x1] %v2745_v31  ;;  %v3581_v33 = vpop.f32.mrb[17].mxu1 }
0x1aa5 PF: > { %2832 = sbr.rel (!%p4089_p10) target bundleno = 6828 (0x1aac), region = 202  ;;  %s3142_s19 = sshll.u32 (%p4089_p10), %s4070_s12, 5  ;;  %v2877_v12 = vld [vmem:[%s4327_s22] sm:$0xff] (%p4089_p10)  ;;  %v2879_v13 = vld [vmem:[%s4327_s22 + $0x8] sm:$0xff] (%p4089_p10)  ;;  %v2881_v19 = vld [vmem:[%s4327_s22 + $0x10] sm:$0xff] (%p4089_p10) }
0x1aa6   : > { %s2835_s2 = scalar_lea.vmem (%p4089_p10), %s4796_s18, %s3142_s19  ;;  %v2883_v14 = vld [vmem:[%s4327_s22 + $0x18] sm:$0xff] (%p4089_p10)  ;;  %v2885_v15 = vld [vmem:[%s4327_s22 + $0x20] sm:$0xff] (%p4089_p10)  ;;  %v2887_v18 = vld [vmem:[%s4327_s22 + $0x28] sm:$0xff] (%p4089_p10) }
0x1aa7   : > { %2878 = vst [vmem:[%s2835_s2] sm:$0xff] (%p4089_p10), %v2877_v12  ;;  %2880 = vst [vmem:[%s2835_s2 + $0x8] sm:$0xff] (%p4089_p10), %v2879_v13  ;;  %v2889_v10 = vld [vmem:[%s4327_s22 + $0x30] sm:$0xff] (%p4089_p10)  ;;  %v2891_v11 = vld [vmem:[%s4327_s22 + $0x38] sm:$0xff] (%p4089_p10) }
0x1aa8   : > { %2882 = vst [vmem:[%s2835_s2 + $0x10] sm:$0xff] (%p4089_p10), %v2881_v19  ;;  %2884 = vst [vmem:[%s2835_s2 + $0x18] sm:$0xff] (%p4089_p10), %v2883_v14 }
0x1aa9   : > { %2886 = vst [vmem:[%s2835_s2 + $0x40] sm:$0xff] (%p4089_p10), %v2885_v15  ;;  %2888 = vst [vmem:[%s2835_s2 + $0x48] sm:$0xff] (%p4089_p10), %v2887_v18 }
0x1aaa   : > { %2890 = vst [vmem:[%s2835_s2 + $0x50] sm:$0xff] (%p4089_p10), %v2889_v10  ;;  %2892 = vst [vmem:[%s2835_s2 + $0x58] sm:$0xff] (%p4089_p10), %v2891_v11 }
0x1aac PF: > { %p32_p2 = scmp.ge.s32.totalorder %s4073_s21, 4   ;;  %s4833_s19 = smov %s3940_s1 }
0x1aad   : > { %s4834_s1 = smov %s4083_s23  ;;  %s4835_s20 = smov %s4073_s21 }
0x1aae   :  { %34 = sbr.rel (!%p32_p2) target bundleno = 24 (0x18), region = 314 }

</bundles_post_ra>
